<compile_context>
chip_gen: v7x
topology: tpu7x:2x2x1
jax: 0.10.0
libtpu: 0.0.40
codegen_flags: <defaults>
</compile_context>

<pallas_src>
import functools

import jax
import jax.numpy as jnp
from jax.experimental import pallas as pl
from jax.experimental.pallas import tpu as pltpu

EPS = 1e-5
LANE = 128
VMEM_LIMIT_BYTES = 32 * 1024 * 1024   # explicit (v5e default scoped is 16 MiB)


def _conv_bn_act_kernel(x_ref, xt_ref, xb_ref, scale_ref, bias_ref, w_ref,
                        y_ref, stats_ref, pad_ref, col_ref, acc_ref, *,
                        apply_relu):
    """One (batch, row-tile) step: y = conv3x3(act(x*scale + bias)) + tile stats."""
    _, TH, W, Cp = x_ref.shape
    cdt = pad_ref.dtype                      # MXU compute dtype (bf16 or f32)
    r = pl.program_id(1)
    nr = pl.num_programs(1)

    sc = scale_ref[...].reshape(1, 1, Cp)    # f32 folded-BN scale
    bi = bias_ref[...].reshape(1, 1, Cp)     # f32 folded-BN bias

    def pre(v3):                             # pointwise pre-conv op, f32 math
        t = v3.astype(jnp.float32) * sc + bi
        if apply_relu:
            t = jnp.maximum(t, 0.0)
        return t.astype(cdt)

    # Lateral zero padding (columns 0 and W+1, all rows incl. corners).
    zcol = jnp.zeros((TH + 2, 1, Cp), cdt)
    pad_ref[:, 0:1, :] = zcol
    pad_ref[:, W + 1:W + 2, :] = zcol

    # Interior rows of this tile.
    pad_ref[1:TH + 1, 1:W + 1, :] = pre(x_ref[...].reshape(TH, W, Cp))

    # Top / bottom 1-row halos: neighbouring image rows, or zeros at the edge.
    zrow = jnp.zeros((1, W, Cp), cdt)

    @pl.when(r > 0)
    def _():
        pad_ref[0:1, 1:W + 1, :] = pre(xt_ref[...].reshape(1, W, Cp))

    @pl.when(r == 0)
    def _():
        pad_ref[0:1, 1:W + 1, :] = zrow

    @pl.when(r < nr - 1)
    def _():
        pad_ref[TH + 1:TH + 2, 1:W + 1, :] = pre(xb_ref[...].reshape(1, W, Cp))

    @pl.when(r == nr - 1)
    def _():
        pad_ref[TH + 1:TH + 2, 1:W + 1, :] = zrow

    # Conv: per ky, pack the 3 kx taps along K -> one [TH*W, 3*Cp] slab and a
    # single MXU contraction (K = 3*Cp); accumulate the 3 ky partials in f32.
    for ky in range(3):
        for kx in range(3):
            col_ref[:, kx * Cp:(kx + 1) * Cp] = \
                pad_ref[ky:ky + TH, kx:kx + W, :].reshape(TH * W, Cp)
        part = jnp.dot(col_ref[...], w_ref[ky],
                       preferred_element_type=jnp.float32)      # [TH*W, Cp]
        if ky == 0:
            acc_ref[...] = part
        else:
            acc_ref[...] += part

    # Store the (possibly bf16) conv output first, then compute this tile's
    # channel sum / sum-of-squares from the f32 accumulator (pre-downcast).
    y_ref[...] = acc_ref[...].reshape(1, TH, W, Cp).astype(y_ref.dtype)

    ones = jnp.ones((1, TH * W), jnp.float32)
    a = acc_ref[...]
    s = jnp.dot(ones, a, preferred_element_type=jnp.float32)        # [1, Cp]
    q = jnp.dot(ones, a * a, preferred_element_type=jnp.float32)    # [1, Cp]
    stats_ref[0:1, 0:1, 0:1, :] = s.reshape(1, 1, 1, Cp)
    stats_ref[0:1, 0:1, 1:2, :] = q.reshape(1, 1, 1, Cp)


def _conv_bn_act(x, scale, bias, w_flat, *, apply_relu, compute_dtype, th):
    """y[n, tile] = conv3x3(act(x*scale + bias)); also per-tile channel stats."""
    N, H, W, Cp = x.shape
    R = H // th
    kernel = functools.partial(_conv_bn_act_kernel, apply_relu=apply_relu)

    def mid_map(n, r):
        return (n, r, 0, 0)

    def top_map(n, r):                       # image row r*th - 1 (clamped)
        return (n, jnp.maximum(r * th - 1, 0), 0, 0)

    def bot_map(n, r):                       # image row (r+1)*th (clamped)
        return (n, jnp.minimum(r * th + th, H - 1), 0, 0)

    return pl.pallas_call(
        kernel,
        out_shape=(jax.ShapeDtypeStruct((N, H, W, Cp), compute_dtype),
                   jax.ShapeDtypeStruct((N, R, 2, Cp), jnp.float32)),
        grid=(N, R),
        in_specs=[
            pl.BlockSpec((1, th, W, Cp), mid_map),
            pl.BlockSpec((1, 1, W, Cp), top_map),
            pl.BlockSpec((1, 1, W, Cp), bot_map),
            pl.BlockSpec((1, Cp), lambda n, r: (0, 0)),
            pl.BlockSpec((1, Cp), lambda n, r: (0, 0)),
            pl.BlockSpec((3, 3 * Cp, Cp), lambda n, r: (0, 0, 0)),
        ],
        out_specs=(pl.BlockSpec((1, th, W, Cp), mid_map),
                   pl.BlockSpec((1, 1, 2, Cp), lambda n, r: (n, r, 0, 0))),
        scratch_shapes=[pltpu.VMEM((th + 2, W + 2, Cp), compute_dtype),
                        pltpu.VMEM((th * W, 3 * Cp), compute_dtype),
                        pltpu.VMEM((th * W, Cp), jnp.float32)],
        compiler_params=pltpu.CompilerParams(
            dimension_semantics=("parallel", "parallel"),
            vmem_limit_bytes=VMEM_LIMIT_BYTES),
    )(x, x, x, scale, bias, w_flat)


def _bn_residual_relu_kernel(h_ref, x_ref, scale_ref, bias_ref, o_ref):
    Cp = h_ref.shape[-1]
    sc = scale_ref[...].reshape(1, 1, 1, Cp)
    bi = bias_ref[...].reshape(1, 1, 1, Cp)
    o_ref[...] = jnp.maximum(
        h_ref[...].astype(jnp.float32) * sc + bi
        + x_ref[...].astype(jnp.float32), 0.0)


def _bn_residual_relu(h, x, scale, bias, *, th):
    N, H, W, Cp = h.shape
    return pl.pallas_call(
        _bn_residual_relu_kernel,
        out_shape=jax.ShapeDtypeStruct((N, H, W, Cp), jnp.float32),
        grid=(N, H // th),
        in_specs=[pl.BlockSpec((1, th, W, Cp), lambda n, r: (n, r, 0, 0)),
                  pl.BlockSpec((1, th, W, Cp), lambda n, r: (n, r, 0, 0)),
                  pl.BlockSpec((1, Cp), lambda n, r: (0, 0)),
                  pl.BlockSpec((1, Cp), lambda n, r: (0, 0))],
        out_specs=pl.BlockSpec((1, th, W, Cp), lambda n, r: (n, r, 0, 0)),
        compiler_params=pltpu.CompilerParams(
            dimension_semantics=("parallel", "parallel"),
            vmem_limit_bytes=VMEM_LIMIT_BYTES),
    )(h, x, scale, bias)


def _fold_bn(stats, gamma_p, beta_p, tile_count, total_count):
    """[N, R, 2, Cp] partial (sum, sum_sq) -> folded scale/bias [1, Cp].

    Chan-style per-tile mean-corrected combine (avoids E[x^2]-mean^2 cancellation).
    """
    cp = stats.shape[-1]
    s = stats.reshape(-1, 2, cp).astype(jnp.float32)
    sums = s[:, 0, :]                                     # [T, Cp]
    sqs = s[:, 1, :]
    mean_i = sums / tile_count
    m2_i = jnp.maximum(sqs - sums * mean_i, 0.0)          # per-tile central SS
    mean = sums.sum(axis=0) / total_count
    m2 = m2_i.sum(axis=0) + tile_count * ((mean_i - mean) ** 2).sum(axis=0)
    var = jnp.maximum(m2 / total_count, 0.0)              # biased, as PyTorch BN
    scale = gamma_p * jax.lax.rsqrt(var + EPS)
    bias = beta_p - mean * scale
    return scale.reshape(1, cp), bias.reshape(1, cp)


def _pack_weight(w, cp, dtype):
    """HWIO [3,3,C,C] -> zero-padded [3,3,Cp,Cp] -> [3, 3*Cp, Cp] (row = kx*Cp+cin)."""
    cin, cout = w.shape[2], w.shape[3]
    wp = jnp.zeros((3, 3, cp, cp), jnp.float32).at[:, :, :cin, :cout].set(w)
    return wp.reshape(3, 3 * cp, cp).astype(dtype)


def _pad_channels(v, cp, fill):
    v = jnp.asarray(v).reshape(-1).astype(jnp.float32)
    return jnp.full((cp,), fill, jnp.float32).at[:v.shape[0]].set(v)


def _pick_row_tile(H, W, cp, itemsize, target_bytes=1 << 20):
    """Largest divisor of H whose activation tile stays around ~1 MiB."""
    budget_rows = max(1, target_bytes // max(1, W * cp * itemsize))
    th = 1
    for d in range(1, H + 1):
        if H % d == 0 and d <= budget_rows:
            th = d
    return th


def basic_block(x_nchw, w1, g1, b1, w2, g2, b2, *,
                compute_dtype=jnp.bfloat16, row_tile=None):
    """BasicBlock forward. x_nchw: [N, C, H, W] f32 (PyTorch layout) -> NCHW f32.

    compute_dtype: dtype of the MXU conv operands AND of the stored
    intermediates h1/h2/residual (bf16 on v6e/v7x for bandwidth, f32 for bit
    accuracy). BN statistics, accumulation and the final output are f32.
    """
    # A production entry point would take/return the padded NHWC slab directly;
    # these layout passes exist only to match the PyTorch NCHW API of the spec.
    x = jnp.transpose(x_nchw, (0, 2, 3, 1)).astype(jnp.float32)      # NHWC
    N, H, W, C = x.shape
    assert w1.shape == (3, 3, C, C) and w2.shape == (3, 3, C, C), \
        "BasicBlock with downsample=None requires inplanes == planes"

    cp = max(LANE, ((C + LANE - 1) // LANE) * LANE)   # lane-dense channel pad
    itemsize = jnp.dtype(compute_dtype).itemsize
    th = row_tile if row_tile is not None else _pick_row_tile(H, W, cp, itemsize)
    assert H % th == 0, "row_tile must divide H"

    x_p = jnp.pad(x, ((0, 0), (0, 0), (0, 0), (0, cp - C))).astype(compute_dtype)
    w1f = _pack_weight(w1, cp, compute_dtype)
    w2f = _pack_weight(w2, cp, compute_dtype)
    g1p, b1p = _pad_channels(g1, cp, 1.0), _pad_channels(b1, cp, 0.0)
    g2p, b2p = _pad_channels(g2, cp, 1.0), _pad_channels(b2, cp, 0.0)

    id_scale = jnp.ones((1, cp), jnp.float32)
    id_bias = jnp.zeros((1, cp), jnp.float32)
    tile_count = th * W
    total = N * H * W

    # conv1 (+ BN1 batch statistics)
    h1, st1 = _conv_bn_act(x_p, id_scale, id_bias, w1f,
                           apply_relu=False, compute_dtype=compute_dtype, th=th)
    sc1, bi1 = _fold_bn(st1, g1p, b1p, tile_count, total)
    # BN1 + ReLU + conv2 (+ BN2 batch statistics)
    h2, st2 = _conv_bn_act(h1, sc1, bi1, w2f,
                           apply_relu=True, compute_dtype=compute_dtype, th=th)
    sc2, bi2 = _fold_bn(st2, g2p, b2p, tile_count, total)
    # BN2 + residual add + ReLU
    out_p = _bn_residual_relu(h2, x_p, sc2, bi2, th=th)

    return jnp.transpose(out_p[..., :C], (0, 3, 1, 2))               # NCHW


def reference_forward(x_nchw, w1, g1, b1, w2, g2, b2):
    """Pure-JAX reference (same math, f32) for a sanity check."""
    def conv(x, w):
        return jax.lax.conv_general_dilated(
            x, w, window_strides=(1, 1), padding=((1, 1), (1, 1)),
            dimension_numbers=("NHWC", "HWIO", "NHWC"))

    def bn(y, g, b):
        mean = y.mean(axis=(0, 1, 2), keepdims=True)
        var = ((y - mean) ** 2).mean(axis=(0, 1, 2), keepdims=True)
        return (y - mean) * jax.lax.rsqrt(var + EPS) * g.reshape(1, 1, 1, -1) \
            + b.reshape(1, 1, 1, -1)

    x = jnp.transpose(x_nchw, (0, 2, 3, 1)).astype(jnp.float32)
    h = jax.nn.relu(bn(conv(x, w1), g1, b1))
    h = bn(conv(h, w2), g2, b2)
    out = jax.nn.relu(h + x)
    return jnp.transpose(out, (0, 3, 1, 2))


if __name__ == "__main__":
    # Small shapes consistent with BasicBlock(inplanes=4, planes=4, stride=1).
    N, C, H, W = 2, 4, 16, 16
    key = jax.random.PRNGKey(0)
    kx, kw1, kw2, kg1, kb1, kg2, kb2 = jax.random.split(key, 7)

    x = jax.random.normal(kx, (N, C, H, W), jnp.float32)
    w1 = 0.2 * jax.random.normal(kw1, (3, 3, C, C), jnp.float32)   # HWIO
    w2 = 0.2 * jax.random.normal(kw2, (3, 3, C, C), jnp.float32)
    g1 = 1.0 + 0.1 * jax.random.normal(kg1, (C,), jnp.float32)
    b1 = 0.1 * jax.random.normal(kb1, (C,), jnp.float32)
    g2 = 1.0 + 0.1 * jax.random.normal(kg2, (C,), jnp.float32)
    b2 = 0.1 * jax.random.normal(kb2, (C,), jnp.float32)

    ref = jax.block_until_ready(reference_forward(x, w1, g1, b1, w2, g2, b2))

    # Bit-careful path: f32 operands/storage, row tiling exercised (2 row tiles
    # per image -> halo reads across tile boundaries), tight tolerance.
    out_f32 = jax.block_until_ready(
        basic_block(x, w1, g1, b1, w2, g2, b2,
                    compute_dtype=jnp.float32, row_tile=8))
    assert out_f32.shape == (N, C, H, W)
    assert jnp.allclose(out_f32, ref, rtol=1e-3, atol=1e-3), \
        f"f32 path max abs diff = {jnp.max(jnp.abs(out_f32 - ref))}"

    # Fast path: bf16 MXU operands + bf16 intermediates/residual storage
    # (f32 accumulation and BN stats), single row tile, looser tolerance.
    out_bf16 = jax.block_until_ready(
        basic_block(x, w1, g1, b1, w2, g2, b2,
                    compute_dtype=jnp.bfloat16, row_tile=16))
    assert out_bf16.shape == (N, C, H, W)
    assert jnp.allclose(out_bf16, ref, rtol=3e-2, atol=3e-2), \
        f"bf16 path max abs diff = {jnp.max(jnp.abs(out_bf16 - ref))}"

    print("KERNEL_OK")
</pallas_src>

<mosaic_0001>
module attributes {stable_mosaic.version = 11 : i64} {
  func.func @_conv_bn_act_kernel(%arg0: i32, %arg1: i32, %arg2: memref<1x8x16x128xf32, #tpu.memory_space<vmem>>, %arg3: memref<1x1x16x128xf32, #tpu.memory_space<vmem>>, %arg4: memref<1x1x16x128xf32, #tpu.memory_space<vmem>>, %arg5: memref<1x128xf32, #tpu.memory_space<vmem>>, %arg6: memref<1x128xf32, #tpu.memory_space<vmem>>, %arg7: memref<3x384x128xf32, #tpu.memory_space<vmem>>, %arg8: memref<1x8x16x128xf32, #tpu.memory_space<vmem>>, %arg9: memref<1x1x2x128xf32, #tpu.memory_space<vmem>>, %arg10: memref<10x18x128xf32, #tpu.memory_space<vmem>>, %arg11: memref<128x384xf32, #tpu.memory_space<vmem>>, %arg12: memref<128x128xf32, #tpu.memory_space<vmem>>) attributes {dimension_semantics = [#tpu.dimension_semantics<parallel>, #tpu.dimension_semantics<parallel>], iteration_bounds = array<i64: 2, 2>, scalar_prefetch = 0 : i64, scratch_operands = 3 : i64, tpu.core_type = #tpu.core_type<tc>, window_params = [{transform_indices = @transform_0, window_bounds = array<i64: 1, 8, 16, 128>}, {transform_indices = @transform_1, window_bounds = array<i64: 1, 1, 16, 128>}, {transform_indices = @transform_2, window_bounds = array<i64: 1, 1, 16, 128>}, {pipeline_mode = #tpu.pipeline_mode<synchronous>, transform_indices = @transform_3, window_bounds = array<i64: 1, 128>}, {pipeline_mode = #tpu.pipeline_mode<synchronous>, transform_indices = @transform_4, window_bounds = array<i64: 1, 128>}, {pipeline_mode = #tpu.pipeline_mode<synchronous>, transform_indices = @transform_5, window_bounds = array<i64: 3, 384, 128>}, {transform_indices = @transform_6, window_bounds = array<i64: 1, 8, 16, 128>}, {transform_indices = @transform_7, window_bounds = array<i64: 1, 1, 2, 128>}]} {
    %c0 = arith.constant 0 : index
    %c0_0 = arith.constant 0 : index
    %0 = vector.load %arg5[%c0, %c0_0] : memref<1x128xf32, #tpu.memory_space<vmem>>, vector<1x128xf32>
    %1 = vector.shape_cast %0 : vector<1x128xf32> to vector<1x1x128xf32>
    %c0_1 = arith.constant 0 : index
    %c0_2 = arith.constant 0 : index
    %2 = vector.load %arg6[%c0_1, %c0_2] : memref<1x128xf32, #tpu.memory_space<vmem>>, vector<1x128xf32>
    %3 = vector.shape_cast %2 : vector<1x128xf32> to vector<1x1x128xf32>
    %cst = arith.constant 0.000000e+00 : f32
    %4 = vector.broadcast %cst : f32 to vector<10x1x128xf32>
    %c0_3 = arith.constant 0 : index
    %c0_4 = arith.constant 0 : index
    %c0_5 = arith.constant 0 : index
    %5 = vector.load %arg10[%c0_3, %c0_4, %c0_5] : memref<10x18x128xf32, #tpu.memory_space<vmem>>, vector<10x1x128xf32>
    tpu.vector_store %arg10[%c0_3, %c0_4, %c0_5], %4 {strides = array<i32>} : memref<10x18x128xf32, #tpu.memory_space<vmem>>, vector<10x1x128xf32>,
    %c0_6 = arith.constant 0 : index
    %c17 = arith.constant 17 : index
    %c0_7 = arith.constant 0 : index
    %6 = vector.load %arg10[%c0_6, %c17, %c0_7] : memref<10x18x128xf32, #tpu.memory_space<vmem>>, vector<10x1x128xf32>
    tpu.vector_store %arg10[%c0_6, %c17, %c0_7], %4 {strides = array<i32>} : memref<10x18x128xf32, #tpu.memory_space<vmem>>, vector<10x1x128xf32>,
    %c0_8 = arith.constant 0 : index
    %c0_9 = arith.constant 0 : index
    %c0_10 = arith.constant 0 : index
    %c0_11 = arith.constant 0 : index
    %7 = vector.load %arg2[%c0_8, %c0_9, %c0_10, %c0_11] : memref<1x8x16x128xf32, #tpu.memory_space<vmem>>, vector<1x8x16x128xf32>
    %8 = vector.shape_cast %7 : vector<1x8x16x128xf32> to vector<8x16x128xf32>
    %9 = vector.broadcast %1 : vector<1x1x128xf32> to vector<8x16x128xf32>
    %10 = arith.mulf %8, %9 : vector<8x16x128xf32>
    %11 = vector.broadcast %3 : vector<1x1x128xf32> to vector<8x16x128xf32>
    %12 = arith.addf %10, %11 : vector<8x16x128xf32>
    %c1 = arith.constant 1 : index
    %c1_12 = arith.constant 1 : index
    %c0_13 = arith.constant 0 : index
    %13 = vector.load %arg10[%c1, %c1_12, %c0_13] : memref<10x18x128xf32, #tpu.memory_space<vmem>>, vector<8x16x128xf32>
    tpu.vector_store %arg10[%c1, %c1_12, %c0_13], %12 {strides = array<i32>} : memref<10x18x128xf32, #tpu.memory_space<vmem>>, vector<8x16x128xf32>,
    %cst_14 = arith.constant 0.000000e+00 : f32
    %14 = vector.broadcast %cst_14 : f32 to vector<1x16x128xf32>
    %c0_i32 = arith.constant 0 : i32
    %15 = arith.cmpi sgt, %arg1, %c0_i32 : i32
    %16 = arith.extui %15 : i1 to i32
    %c0_i32_15 = arith.constant 0 : i32
    %17 = arith.cmpi ne, %16, %c0_i32_15 : i32
    scf.if %17 {
      %c0_110 = arith.constant 0 : index
      %c0_111 = arith.constant 0 : index
      %c0_112 = arith.constant 0 : index
      %c0_113 = arith.constant 0 : index
      %85 = vector.load %arg3[%c0_110, %c0_111, %c0_112, %c0_113] : memref<1x1x16x128xf32, #tpu.memory_space<vmem>>, vector<1x1x16x128xf32>
      %86 = vector.shape_cast %85 : vector<1x1x16x128xf32> to vector<1x16x128xf32>
      %87 = vector.broadcast %1 : vector<1x1x128xf32> to vector<1x16x128xf32>
      %88 = arith.mulf %86, %87 : vector<1x16x128xf32>
      %89 = vector.broadcast %3 : vector<1x1x128xf32> to vector<1x16x128xf32>
      %90 = arith.addf %88, %89 : vector<1x16x128xf32>
      %c0_114 = arith.constant 0 : index
      %c1_115 = arith.constant 1 : index
      %c0_116 = arith.constant 0 : index
      %91 = vector.load %arg10[%c0_114, %c1_115, %c0_116] : memref<10x18x128xf32, #tpu.memory_space<vmem>>, vector<1x16x128xf32>
      tpu.vector_store %arg10[%c0_114, %c1_115, %c0_116], %90 {strides = array<i32>} : memref<10x18x128xf32, #tpu.memory_space<vmem>>, vector<1x16x128xf32>,
    } else {
    }
    %c0_i32_16 = arith.constant 0 : i32
    %18 = arith.cmpi eq, %arg1, %c0_i32_16 : i32
    %19 = arith.extui %18 : i1 to i32
    %c0_i32_17 = arith.constant 0 : i32
    %20 = arith.cmpi ne, %19, %c0_i32_17 : i32
    scf.if %20 {
      %c0_110 = arith.constant 0 : index
      %c1_111 = arith.constant 1 : index
      %c0_112 = arith.constant 0 : index
      %85 = vector.load %arg10[%c0_110, %c1_111, %c0_112] : memref<10x18x128xf32, #tpu.memory_space<vmem>>, vector<1x16x128xf32>
      tpu.vector_store %arg10[%c0_110, %c1_111, %c0_112], %14 {strides = array<i32>} : memref<10x18x128xf32, #tpu.memory_space<vmem>>, vector<1x16x128xf32>,
    } else {
    }
    %c1_i32 = arith.constant 1 : i32
    %21 = arith.cmpi slt, %arg1, %c1_i32 : i32
    %22 = arith.extui %21 : i1 to i32
    %c0_i32_18 = arith.constant 0 : i32
    %23 = arith.cmpi ne, %22, %c0_i32_18 : i32
    scf.if %23 {
      %c0_110 = arith.constant 0 : index
      %c0_111 = arith.constant 0 : index
      %c0_112 = arith.constant 0 : index
      %c0_113 = arith.constant 0 : index
      %85 = vector.load %arg4[%c0_110, %c0_111, %c0_112, %c0_113] : memref<1x1x16x128xf32, #tpu.memory_space<vmem>>, vector<1x1x16x128xf32>
      %86 = vector.shape_cast %85 : vector<1x1x16x128xf32> to vector<1x16x128xf32>
      %87 = vector.broadcast %1 : vector<1x1x128xf32> to vector<1x16x128xf32>
      %88 = arith.mulf %86, %87 : vector<1x16x128xf32>
      %89 = vector.broadcast %3 : vector<1x1x128xf32> to vector<1x16x128xf32>
      %90 = arith.addf %88, %89 : vector<1x16x128xf32>
      %c9 = arith.constant 9 : index
      %c1_114 = arith.constant 1 : index
      %c0_115 = arith.constant 0 : index
      %91 = vector.load %arg10[%c9, %c1_114, %c0_115] : memref<10x18x128xf32, #tpu.memory_space<vmem>>, vector<1x16x128xf32>
      tpu.vector_store %arg10[%c9, %c1_114, %c0_115], %90 {strides = array<i32>} : memref<10x18x128xf32, #tpu.memory_space<vmem>>, vector<1x16x128xf32>,
    } else {
    }
    %c1_i32_19 = arith.constant 1 : i32
    %24 = arith.cmpi eq, %arg1, %c1_i32_19 : i32
    %25 = arith.extui %24 : i1 to i32
    %c0_i32_20 = arith.constant 0 : i32
    %26 = arith.cmpi ne, %25, %c0_i32_20 : i32
    scf.if %26 {
      %c9 = arith.constant 9 : index
      %c1_110 = arith.constant 1 : index
      %c0_111 = arith.constant 0 : index
      %85 = vector.load %arg10[%c9, %c1_110, %c0_111] : memref<10x18x128xf32, #tpu.memory_space<vmem>>, vector<1x16x128xf32>
      tpu.vector_store %arg10[%c9, %c1_110, %c0_111], %14 {strides = array<i32>} : memref<10x18x128xf32, #tpu.memory_space<vmem>>, vector<1x16x128xf32>,
    } else {
    }
    %c0_21 = arith.constant 0 : index
    %c0_22 = arith.constant 0 : index
    %c0_23 = arith.constant 0 : index
    %27 = vector.load %arg10[%c0_21, %c0_22, %c0_23] : memref<10x18x128xf32, #tpu.memory_space<vmem>>, vector<8x16x128xf32>
    %28 = vector.shape_cast %27 : vector<8x16x128xf32> to vector<128x128xf32>
    %c0_24 = arith.constant 0 : index
    %c0_25 = arith.constant 0 : index
    %29 = vector.load %arg11[%c0_24, %c0_25] : memref<128x384xf32, #tpu.memory_space<vmem>>, vector<128x128xf32>
    tpu.vector_store %arg11[%c0_24, %c0_25], %28 {strides = array<i32>} : memref<128x384xf32, #tpu.memory_space<vmem>>, vector<128x128xf32>,
    %c0_26 = arith.constant 0 : index
    %c1_27 = arith.constant 1 : index
    %c0_28 = arith.constant 0 : index
    %30 = vector.load %arg10[%c0_26, %c1_27, %c0_28] : memref<10x18x128xf32, #tpu.memory_space<vmem>>, vector<8x16x128xf32>
    %31 = vector.shape_cast %30 : vector<8x16x128xf32> to vector<128x128xf32>
    %c0_29 = arith.constant 0 : index
    %c128 = arith.constant 128 : index
    %32 = vector.load %arg11[%c0_29, %c128] : memref<128x384xf32, #tpu.memory_space<vmem>>, vector<128x128xf32>
    tpu.vector_store %arg11[%c0_29, %c128], %31 {strides = array<i32>} : memref<128x384xf32, #tpu.memory_space<vmem>>, vector<128x128xf32>,
    %c0_30 = arith.constant 0 : index
    %c2 = arith.constant 2 : index
    %c0_31 = arith.constant 0 : index
    %33 = vector.load %arg10[%c0_30, %c2, %c0_31] : memref<10x18x128xf32, #tpu.memory_space<vmem>>, vector<8x16x128xf32>
    %34 = vector.shape_cast %33 : vector<8x16x128xf32> to vector<128x128xf32>
    %c0_32 = arith.constant 0 : index
    %c256 = arith.constant 256 : index
    %35 = vector.load %arg11[%c0_32, %c256] : memref<128x384xf32, #tpu.memory_space<vmem>>, vector<128x128xf32>
    tpu.vector_store %arg11[%c0_32, %c256], %34 {strides = array<i32>} : memref<128x384xf32, #tpu.memory_space<vmem>>, vector<128x128xf32>,
    %c0_33 = arith.constant 0 : index
    %c0_34 = arith.constant 0 : index
    %36 = vector.load %arg11[%c0_33, %c0_34] : memref<128x384xf32, #tpu.memory_space<vmem>>, vector<128x384xf32>
    %c0_35 = arith.constant 0 : index
    %c0_36 = arith.constant 0 : index
    %c0_37 = arith.constant 0 : index
    %37 = vector.load %arg7[%c0_35, %c0_36, %c0_37] : memref<3x384x128xf32, #tpu.memory_space<vmem>>, vector<1x384x128xf32>
    %38 = vector.shape_cast %37 : vector<1x384x128xf32> to vector<384x128xf32>
    %cst_38 = arith.constant dense<0.000000e+00> : vector<128x128xf32>
    %39 = tpu.matmul %36, %38, %cst_38 {dimension_numbers = #tpu.dot_dimension_numbers<[1], [0], [0], [1], [0, 0, 1, 1], [], []>} : vector<128x384xf32>, vector<384x128xf32>, vector<128x128xf32> -> vector<128x128xf32>
    %c0_39 = arith.constant 0 : index
    %c0_40 = arith.constant 0 : index
    %40 = vector.load %arg12[%c0_39, %c0_40] : memref<128x128xf32, #tpu.memory_space<vmem>>, vector<128x128xf32>
    tpu.vector_store %arg12[%c0_39, %c0_40], %39 {strides = array<i32>} : memref<128x128xf32, #tpu.memory_space<vmem>>, vector<128x128xf32>,
    %c1_41 = arith.constant 1 : index
    %c0_42 = arith.constant 0 : index
    %c0_43 = arith.constant 0 : index
    %41 = vector.load %arg10[%c1_41, %c0_42, %c0_43] : memref<10x18x128xf32, #tpu.memory_space<vmem>>, vector<8x16x128xf32>
    %42 = vector.shape_cast %41 : vector<8x16x128xf32> to vector<128x128xf32>
    %c0_44 = arith.constant 0 : index
    %c0_45 = arith.constant 0 : index
    %43 = vector.load %arg11[%c0_44, %c0_45] : memref<128x384xf32, #tpu.memory_space<vmem>>, vector<128x128xf32>
    tpu.vector_store %arg11[%c0_44, %c0_45], %42 {strides = array<i32>} : memref<128x384xf32, #tpu.memory_space<vmem>>, vector<128x128xf32>,
    %c1_46 = arith.constant 1 : index
    %c1_47 = arith.constant 1 : index
    %c0_48 = arith.constant 0 : index
    %44 = vector.load %arg10[%c1_46, %c1_47, %c0_48] : memref<10x18x128xf32, #tpu.memory_space<vmem>>, vector<8x16x128xf32>
    %45 = vector.shape_cast %44 : vector<8x16x128xf32> to vector<128x128xf32>
    %c0_49 = arith.constant 0 : index
    %c128_50 = arith.constant 128 : index
    %46 = vector.load %arg11[%c0_49, %c128_50] : memref<128x384xf32, #tpu.memory_space<vmem>>, vector<128x128xf32>
    tpu.vector_store %arg11[%c0_49, %c128_50], %45 {strides = array<i32>} : memref<128x384xf32, #tpu.memory_space<vmem>>, vector<128x128xf32>,
    %c1_51 = arith.constant 1 : index
    %c2_52 = arith.constant 2 : index
    %c0_53 = arith.constant 0 : index
    %47 = vector.load %arg10[%c1_51, %c2_52, %c0_53] : memref<10x18x128xf32, #tpu.memory_space<vmem>>, vector<8x16x128xf32>
    %48 = vector.shape_cast %47 : vector<8x16x128xf32> to vector<128x128xf32>
    %c0_54 = arith.constant 0 : index
    %c256_55 = arith.constant 256 : index
    %49 = vector.load %arg11[%c0_54, %c256_55] : memref<128x384xf32, #tpu.memory_space<vmem>>, vector<128x128xf32>
    tpu.vector_store %arg11[%c0_54, %c256_55], %48 {strides = array<i32>} : memref<128x384xf32, #tpu.memory_space<vmem>>, vector<128x128xf32>,
    %c0_56 = arith.constant 0 : index
    %c0_57 = arith.constant 0 : index
    %50 = vector.load %arg11[%c0_56, %c0_57] : memref<128x384xf32, #tpu.memory_space<vmem>>, vector<128x384xf32>
    %c1_58 = arith.constant 1 : index
    %c0_59 = arith.constant 0 : index
    %c0_60 = arith.constant 0 : index
    %51 = vector.load %arg7[%c1_58, %c0_59, %c0_60] : memref<3x384x128xf32, #tpu.memory_space<vmem>>, vector<1x384x128xf32>
    %52 = vector.shape_cast %51 : vector<1x384x128xf32> to vector<384x128xf32>
    %cst_61 = arith.constant dense<0.000000e+00> : vector<128x128xf32>
    %53 = tpu.matmul %50, %52, %cst_61 {dimension_numbers = #tpu.dot_dimension_numbers<[1], [0], [0], [1], [0, 0, 1, 1], [], []>} : vector<128x384xf32>, vector<384x128xf32>, vector<128x128xf32> -> vector<128x128xf32>
    %c0_62 = arith.constant 0 : index
    %c0_63 = arith.constant 0 : index
    %54 = vector.load %arg12[%c0_62, %c0_63] : memref<128x128xf32, #tpu.memory_space<vmem>>, vector<128x128xf32>
    %55 = arith.addf %54, %53 : vector<128x128xf32>
    %c0_64 = arith.constant 0 : index
    %c0_65 = arith.constant 0 : index
    %56 = vector.load %arg12[%c0_64, %c0_65] : memref<128x128xf32, #tpu.memory_space<vmem>>, vector<128x128xf32>
    tpu.vector_store %arg12[%c0_64, %c0_65], %55 {strides = array<i32>} : memref<128x128xf32, #tpu.memory_space<vmem>>, vector<128x128xf32>,
    %c2_66 = arith.constant 2 : index
    %c0_67 = arith.constant 0 : index
    %c0_68 = arith.constant 0 : index
    %57 = vector.load %arg10[%c2_66, %c0_67, %c0_68] : memref<10x18x128xf32, #tpu.memory_space<vmem>>, vector<8x16x128xf32>
    %58 = vector.shape_cast %57 : vector<8x16x128xf32> to vector<128x128xf32>
    %c0_69 = arith.constant 0 : index
    %c0_70 = arith.constant 0 : index
    %59 = vector.load %arg11[%c0_69, %c0_70] : memref<128x384xf32, #tpu.memory_space<vmem>>, vector<128x128xf32>
    tpu.vector_store %arg11[%c0_69, %c0_70], %58 {strides = array<i32>} : memref<128x384xf32, #tpu.memory_space<vmem>>, vector<128x128xf32>,
    %c2_71 = arith.constant 2 : index
    %c1_72 = arith.constant 1 : index
    %c0_73 = arith.constant 0 : index
    %60 = vector.load %arg10[%c2_71, %c1_72, %c0_73] : memref<10x18x128xf32, #tpu.memory_space<vmem>>, vector<8x16x128xf32>
    %61 = vector.shape_cast %60 : vector<8x16x128xf32> to vector<128x128xf32>
    %c0_74 = arith.constant 0 : index
    %c128_75 = arith.constant 128 : index
    %62 = vector.load %arg11[%c0_74, %c128_75] : memref<128x384xf32, #tpu.memory_space<vmem>>, vector<128x128xf32>
    tpu.vector_store %arg11[%c0_74, %c128_75], %61 {strides = array<i32>} : memref<128x384xf32, #tpu.memory_space<vmem>>, vector<128x128xf32>,
    %c2_76 = arith.constant 2 : index
    %c2_77 = arith.constant 2 : index
    %c0_78 = arith.constant 0 : index
    %63 = vector.load %arg10[%c2_76, %c2_77, %c0_78] : memref<10x18x128xf32, #tpu.memory_space<vmem>>, vector<8x16x128xf32>
    %64 = vector.shape_cast %63 : vector<8x16x128xf32> to vector<128x128xf32>
    %c0_79 = arith.constant 0 : index
    %c256_80 = arith.constant 256 : index
    %65 = vector.load %arg11[%c0_79, %c256_80] : memref<128x384xf32, #tpu.memory_space<vmem>>, vector<128x128xf32>
    tpu.vector_store %arg11[%c0_79, %c256_80], %64 {strides = array<i32>} : memref<128x384xf32, #tpu.memory_space<vmem>>, vector<128x128xf32>,
    %c0_81 = arith.constant 0 : index
    %c0_82 = arith.constant 0 : index
    %66 = vector.load %arg11[%c0_81, %c0_82] : memref<128x384xf32, #tpu.memory_space<vmem>>, vector<128x384xf32>
    %c2_83 = arith.constant 2 : index
    %c0_84 = arith.constant 0 : index
    %c0_85 = arith.constant 0 : index
    %67 = vector.load %arg7[%c2_83, %c0_84, %c0_85] : memref<3x384x128xf32, #tpu.memory_space<vmem>>, vector<1x384x128xf32>
    %68 = vector.shape_cast %67 : vector<1x384x128xf32> to vector<384x128xf32>
    %cst_86 = arith.constant dense<0.000000e+00> : vector<128x128xf32>
    %69 = tpu.matmul %66, %68, %cst_86 {dimension_numbers = #tpu.dot_dimension_numbers<[1], [0], [0], [1], [0, 0, 1, 1], [], []>} : vector<128x384xf32>, vector<384x128xf32>, vector<128x128xf32> -> vector<128x128xf32>
    %c0_87 = arith.constant 0 : index
    %c0_88 = arith.constant 0 : index
    %70 = vector.load %arg12[%c0_87, %c0_88] : memref<128x128xf32, #tpu.memory_space<vmem>>, vector<128x128xf32>
    %71 = arith.addf %70, %69 : vector<128x128xf32>
    %c0_89 = arith.constant 0 : index
    %c0_90 = arith.constant 0 : index
    %72 = vector.load %arg12[%c0_89, %c0_90] : memref<128x128xf32, #tpu.memory_space<vmem>>, vector<128x128xf32>
    tpu.vector_store %arg12[%c0_89, %c0_90], %71 {strides = array<i32>} : memref<128x128xf32, #tpu.memory_space<vmem>>, vector<128x128xf32>,
    %c0_91 = arith.constant 0 : index
    %c0_92 = arith.constant 0 : index
    %73 = vector.load %arg12[%c0_91, %c0_92] : memref<128x128xf32, #tpu.memory_space<vmem>>, vector<128x128xf32>
    %74 = vector.shape_cast %73 : vector<128x128xf32> to vector<1x8x16x128xf32>
    %c0_93 = arith.constant 0 : index
    %c0_94 = arith.constant 0 : index
    %c0_95 = arith.constant 0 : index
    %c0_96 = arith.constant 0 : index
    %75 = vector.load %arg8[%c0_93, %c0_94, %c0_95, %c0_96] : memref<1x8x16x128xf32, #tpu.memory_space<vmem>>, vector<1x8x16x128xf32>
    tpu.vector_store %arg8[%c0_93, %c0_94, %c0_95, %c0_96], %74 {strides = array<i32>} : memref<1x8x16x128xf32, #tpu.memory_space<vmem>>, vector<1x8x16x128xf32>,
    %cst_97 = arith.constant 1.000000e+00 : f32
    %76 = vector.broadcast %cst_97 : f32 to vector<1x128xf32>
    %c0_98 = arith.constant 0 : index
    %c0_99 = arith.constant 0 : index
    %77 = vector.load %arg12[%c0_98, %c0_99] : memref<128x128xf32, #tpu.memory_space<vmem>>, vector<128x128xf32>
    %cst_100 = arith.constant dense<0.000000e+00> : vector<1x128xf32>
    %78 = tpu.matmul %76, %77, %cst_100 {dimension_numbers = #tpu.dot_dimension_numbers<[1], [0], [0], [1], [0, 0, 1, 1], [], []>} : vector<1x128xf32>, vector<128x128xf32>, vector<1x128xf32> -> vector<1x128xf32>
    %79 = arith.mulf %77, %77 : vector<128x128xf32>
    %cst_101 = arith.constant dense<0.000000e+00> : vector<1x128xf32>
    %80 = tpu.matmul %76, %79, %cst_101 {dimension_numbers = #tpu.dot_dimension_numbers<[1], [0], [0], [1], [0, 0, 1, 1], [], []>} : vector<1x128xf32>, vector<128x128xf32>, vector<1x128xf32> -> vector<1x128xf32>
    %81 = vector.shape_cast %78 : vector<1x128xf32> to vector<1x1x1x128xf32>
    %c0_102 = arith.constant 0 : index
    %c0_103 = arith.constant 0 : index
    %c0_104 = arith.constant 0 : index
    %c0_105 = arith.constant 0 : index
    %82 = vector.load %arg9[%c0_102, %c0_103, %c0_104, %c0_105] : memref<1x1x2x128xf32, #tpu.memory_space<vmem>>, vector<1x1x1x128xf32>
    tpu.vector_store %arg9[%c0_102, %c0_103, %c0_104, %c0_105], %81 {strides = array<i32>} : memref<1x1x2x128xf32, #tpu.memory_space<vmem>>, vector<1x1x1x128xf32>,
    %83 = vector.shape_cast %80 : vector<1x128xf32> to vector<1x1x1x128xf32>
    %c0_106 = arith.constant 0 : index
    %c0_107 = arith.constant 0 : index
    %c1_108 = arith.constant 1 : index
    %c0_109 = arith.constant 0 : index
    %84 = vector.load %arg9[%c0_106, %c0_107, %c1_108, %c0_109] : memref<1x1x2x128xf32, #tpu.memory_space<vmem>>, vector<1x1x1x128xf32>
    tpu.vector_store %arg9[%c0_106, %c0_107, %c1_108, %c0_109], %83 {strides = array<i32>} : memref<1x1x2x128xf32, #tpu.memory_space<vmem>>, vector<1x1x1x128xf32>,
    return
  }
  func.func @transform_0(%arg0: i32, %arg1: i32) -> (i32, i32, i32, i32) {
    %c0_i32 = arith.constant 0 : i32
    %c0_i32_0 = arith.constant 0 : i32
    %c0_i32_1 = arith.constant 0 : i32
    return %arg0, %arg1, %c0_i32, %c0_i32_0 : i32, i32, i32, i32
  }
  func.func @transform_1(%arg0: i32, %arg1: i32) -> (i32, i32, i32, i32) {
    %c8_i32 = arith.constant 8 : i32
    %0 = arith.muli %arg1, %c8_i32 : i32
    %c1_i32 = arith.constant 1 : i32
    %1 = arith.subi %0, %c1_i32 : i32
    %c0_i32 = arith.constant 0 : i32
    %2 = arith.maxsi %1, %c0_i32 : i32
    %c0_i32_0 = arith.constant 0 : i32
    %c0_i32_1 = arith.constant 0 : i32
    %c0_i32_2 = arith.constant 0 : i32
    return %arg0, %2, %c0_i32_0, %c0_i32_1 : i32, i32, i32, i32
  }
  func.func @transform_2(%arg0: i32, %arg1: i32) -> (i32, i32, i32, i32) {
    %c8_i32 = arith.constant 8 : i32
    %0 = arith.muli %arg1, %c8_i32 : i32
    %c8_i32_0 = arith.constant 8 : i32
    %1 = arith.addi %0, %c8_i32_0 : i32
    %c15_i32 = arith.constant 15 : i32
    %2 = arith.minsi %1, %c15_i32 : i32
    %c0_i32 = arith.constant 0 : i32
    %c0_i32_1 = arith.constant 0 : i32
    %c0_i32_2 = arith.constant 0 : i32
    return %arg0, %2, %c0_i32, %c0_i32_1 : i32, i32, i32, i32
  }
  func.func @transform_3(%arg0: i32, %arg1: i32) -> (i32, i32) {
    %c0_i32 = arith.constant 0 : i32
    %c0_i32_0 = arith.constant 0 : i32
    %c0_i32_1 = arith.constant 0 : i32
    return %c0_i32, %c0_i32_0 : i32, i32
  }
  func.func @transform_4(%arg0: i32, %arg1: i32) -> (i32, i32) {
    %c0_i32 = arith.constant 0 : i32
    %c0_i32_0 = arith.constant 0 : i32
    %c0_i32_1 = arith.constant 0 : i32
    return %c0_i32, %c0_i32_0 : i32, i32
  }
  func.func @transform_5(%arg0: i32, %arg1: i32) -> (i32, i32, i32) {
    %c0_i32 = arith.constant 0 : i32
    %c0_i32_0 = arith.constant 0 : i32
    %c0_i32_1 = arith.constant 0 : i32
    %c0_i32_2 = arith.constant 0 : i32
    return %c0_i32, %c0_i32_0, %c0_i32_1 : i32, i32, i32
  }
  func.func @transform_6(%arg0: i32, %arg1: i32) -> (i32, i32, i32, i32) {
    %c0_i32 = arith.constant 0 : i32
    %c0_i32_0 = arith.constant 0 : i32
    %c0_i32_1 = arith.constant 0 : i32
    return %arg0, %arg1, %c0_i32, %c0_i32_0 : i32, i32, i32, i32
  }
  func.func @transform_7(%arg0: i32, %arg1: i32) -> (i32, i32, i32, i32) {
    %c0_i32 = arith.constant 0 : i32
    %c0_i32_0 = arith.constant 0 : i32
    %c0_i32_1 = arith.constant 0 : i32
    return %arg0, %arg1, %c0_i32, %c0_i32_0 : i32, i32, i32, i32
  }
}

</mosaic_0001>

<bundles_post_ra>
// kernel: tpu_custom_call.1
= control target key start
LH: loop header
LB: loop body
LE: loop exit
PB: predicated region body
PF: predicated region fallthrough
CT: control target
= control target key end

     0   :  { %s5048_s0 = inlined_call_operand.hbm [shape: f32[2,16,16,128], index: 0, kind: input, shape index: {}]   ;;  %s5049_s1 = inlined_call_operand.hbm [shape: f32[2,16,16,128], index: 1, kind: input, shape index: {}]   ;;  %s5050_s2 = inlined_call_operand.hbm [shape: f32[2,16,16,128], index: 2, kind: input, shape index: {}]   ;;  %s5051_s3 = inlined_call_operand.vmem [shape: f32[1,128], index: 3, kind: input, shape index: {}]   ;;  %s5052_s4 = inlined_call_operand.vmem [shape: f32[1,128], index: 4, kind: input, shape index: {}]   ;;  %s5053_s5 = inlined_call_operand.hbm [shape: f32[3,384,128], index: 5, kind: input, shape index: {}]   ;;  %s5054_s6 = inlined_call_operand.hbm [shape: f32[2,16,16,128], index: 6, kind: output, shape index: {0}]   ;;  %s5055_s7 = inlined_call_operand.hbm [shape: f32[2,2,2,128], index: 7, kind: output, shape index: {1}]  }
   0x1   :  { %5084 = sst [smem:[#allocation38_spill]] %s5048_s0 }
   0x2   :  { %5085 = sst [smem:[#allocation39_spill]] %s5049_s1 }
   0x3   :  { %5086 = sst [smem:[#allocation40_spill]] %s5050_s2 }
   0x4   :  { %5087 = sst [smem:[#allocation41_spill]] %s5051_s3 }
   0x5   :  { %5088 = sst [smem:[#allocation42_spill]] %s5052_s4 }
   0x6   :  { %5089 = sst [smem:[#allocation43_spill]] %s5053_s5 }
   0x7   :  { %5090 = sst [smem:[#allocation44_spill]] %s5054_s6 }
   0x8   :  { %5091 = sst [smem:[#allocation45_spill]] %s5055_s7 }
   0x9   :  { %13 = vsyncpa [#allocation6], 0 }
   0xa   :  { %15 = vsyncpa [#allocation6 + $0x1], 0 }
   0xb   :  { %16 = vsyncpa [#allocation9], 0 }
   0xc   :  { %18 = vsyncpa [#allocation9 + $0x1], 0 }
   0xd   :  { %19 = vsyncpa [#allocation12], 0 }
   0xe   :  { %20 = vsyncpa [#allocation7], 0 }
   0xf   :  { %22 = vsyncpa [#allocation7 + $0x1], 0 }
  0x10   :  { %23 = vsyncpa [#allocation15], 0 }
  0x11   :  { %25 = vsyncpa [#allocation15 + $0x1], 0  ;;  %s4095_s24 = smov 0   ;;  %s4097_s25 = smov 0  }
  0x12   :  { %s4099_s26 = smov 0   ;;  %s4101_s27 = smov 0  }
  0x13   :  { %s4103_s28 = smov 0   ;;  %s4105_s29 = smov 0  }
  0x14   :  { %s4107_s30 = smov 0   ;;  %s4109_s8 = smov 0  }
  0x15   :  { %s4111_s9 = smov 0   ;;  %s4113_s10 = smov 0  }
  0x16   :  { %s4115_s11 = smov 0   ;;  %s4117_s12 = smov 0  }
  0x17   :  { %s4119_s13 = smov 0   ;;  %s4121_s14 = smov 0  }
  0x18 LB: > { %5092 = sst [smem:[#allocation22_spill]] %s3985_s24  ;;  %s40_s15 = sadd.s32 1, %s4029_s12  ;;  %s4037_s14 = sphi %s4121_s14, %s31_s14   ;;  %s4033_s13 = sphi %s4119_s13, %s5172_s13   ;;  %s4029_s12 = sphi %s4117_s12, %s5171_s12   ;;  %s4025_s11 = sphi %s4115_s11, %s5170_s11   ;;  %s4021_s10 = sphi %s4113_s10, %s5169_s10   ;;  %s4017_s9 = sphi %s4111_s9, %s5168_s9   ;;  %s4013_s8 = sphi %s4109_s8, %s5177_s8   ;;  %s4009_s30 = sphi %s4107_s30, %s5176_s30   ;;  %s4005_s29 = sphi %s4105_s29, %s5166_s29   ;;  %s4001_s28 = sphi %s4103_s28, %s5175_s28   ;;  %s3997_s27 = sphi %s4101_s27, %s5174_s27   ;;  %s3993_s26 = sphi %s4099_s26, %s5173_s26   ;;  %s3989_s25 = sphi %s4097_s25, %s5164_s25   ;;  %s3985_s24 = sphi %s4095_s24, %s5163_s24  }
  0x19   : > { %5093 = sst [smem:[#allocation23_spill]] %s3989_s25  ;;  %s43_s16 = sadd.s32 1, %s4033_s13 }
  0x1a   : > { %5094 = sst [smem:[#allocation24_spill]] %s3993_s26  ;;  %p41_p0 = scmp.ge.s32.totalorder %s40_s15, 2 }
  0x1b   : > { %5095 = sst [smem:[#allocation25_spill]] %s4005_s29  ;;  %p5069_p1 = scmp.eq.s32.totalorder %s4037_s14, 0 }
  0x1c   : > { %5096 = sst [smem:[#allocation26_spill]] %s4017_s9  ;;  %s2589_s17 = sshll.u32 %s4029_s12, 3 }
  0x1d   : > { %5097 = sst [smem:[#allocation27_spill]] %s4021_s10  ;;  %s88_s18 = sadd.s32 1, %s4005_s29 }
  0x1e   : > { %5098 = sst [smem:[#allocation28_spill]] %s4025_s11  ;;  %s5179_s15 = smov (%p41_p0, %s40_s15), 0 }
  0x1f   : > { %5099 = sst [smem:[#allocation29_spill]] %s4029_s12  ;;  %s5181_s16 = smov (!%p41_p0, %s43_s16), %s4033_s13 }
  0x20   : > { %5100 = sst [smem:[#allocation30_spill]] %s4033_s13  ;;  %s48_s19 = ssub.s32 %s4029_s12, %s5179_s15 }
  0x21   : > { %5101 = sst [smem:[#allocation31_spill]] %s5179_s15  ;;  %s2590_s20 = sadd.s32 4294967295, %s2589_s17 }
  0x22   : > { %p45_p2 = scmp.ge.s32.totalorder %s5181_s16, 2  ;;  %p77_p3 = scmp.gt.s32.totalorder %s2590_s20, 0 }
  0x23   : > { %s2591_s21 = sshll.u32 %s5179_s15, 3  ;;  %p95_p4 = scmp.ne.s32.totalorder %s4005_s29, %s4001_s28 }
  0x24   : > { %s5183_s16 = smov (%p45_p2, %s5181_s16), 0  ;;  %s5185_s20 = smov (!%p77_p3, %s2590_s20), 0 }
  0x25   : > { %5102 = sst [smem:[#allocation32_spill]] %s5183_s16  ;;  %s4182_s22 = ssub.s32 %s4033_s13, %s5183_s16 }
  0x26   : > { %5103 = sst [smem:[#allocation33_spill]] %s4182_s22  ;;  %s2592_s23 = sadd.s32 4294967295, %s2591_s21 }
  0x27   : > { %s4185_s7 = sor.u32 %s48_s19, %s4182_s22  ;;  %p81_p5 = scmp.gt.s32.totalorder %s2592_s23, 0 }
  0x28   : > { %p4190_p7 = por %p95_p4, %p5069_p1  ;;  %p101_p8 = scmp.ne.s32.totalorder %s4001_s28, %s3997_s27 }
  0x29   : > { %s5187_s23 = smov (!%p81_p5, %s2592_s23), 0  ;;  %s4196_s16 = sadd.s32 8, %s2589_s17 }
  0x2a   : > { %5105 = sst [smem:[#allocation34_spill]] %s4196_s16  ;;  %s84_s6 = ssub.s32 %s5185_s20, %s5187_s23 }
  0x2b   : > { %s85_s11 = sor.u32 %s84_s6, %s4182_s22  ;;  %s4200_s19 = sadd.s32 8, %s2591_s21 }
  0x2c   : > { %p86_p10 = scmp.eq.s32.totalorder %s85_s11, 0  ;;  %p5068_p12 = scmp.lt.s32.totalorder %s4037_s14, 4 }
  0x2d   : > { %s4208_s4 = sshll.u32 %s4033_s13, 5  ;;  %s323_s3 = sand.u32 1, %s4037_s14  }
  0x2e   : > { %s4204_s10 = scalar_select %p86_p10, %s4005_s29, %s88_s18  }
  0x2f   : > { %s325_s17 = sand.u32 1, %s4005_s29   ;;  %s2606_s24 = sshll.u32 %s5185_s20, 1 }
  0x30   : > { %5106 = sst [smem:[#allocation35_spill]] %s4204_s10  ;;  %s2603_s2 = sshll.u32 %s325_s17, 4 }
  0x31   : > { %s337_s23 = sadd.s32 %s2606_s24, %s4208_s4  ;;  %s327_s6 = scalar_lea.vmem [#allocation8], %s2603_s2 }
  0x32   : > { %s2608_s25 = sshll.u32 %s337_s23, 7  ;;  %s340_s21 = sshll.u32 %s327_s6, 4  ;;  %s4218_s21 = int_to_ptr.vmem [resolvable:$true] %s340_s21 }
  0x33   : > { %s5107_s1 = sld [smem:[#allocation39_spill]]  ;;  %p4224_p13 = pnand %p5068_p12, %p4190_p7 }
  0x34   : > { %s4228_s2 = scalar_lea.sflag [#allocation9], %s323_s3 }
  0x35   : > { %p3731_p2 = pneg %p4224_p13 }
  0x39   : > { %s4216_s26 = scalar_lea.hbm %s5107_s1, %s2608_s25  ;;  %s3734_s15 = scalar_lea.hbm %s5107_s1, 8192 }
  0x3a   : > { %s3729_s24 = scalar_lea.hbm %s4216_s26, 256  ;;  %p3735_p5 = scmp.lt.u32.totalorder %s4216_s26, %s5107_s1 }
  0x3b   : > { %p3730_p0 = scmp.ne.s32.totalorder %s4216_s26, %s3729_s24  ;;  %p3736_p7 = scmp.lt.u32.totalorder %s3734_s15, %s3729_s24 }
  0x3c   : > { %p3738_p11 = scmp.lt.u32.totalorder %s3729_s24, %s4216_s26 }
  0x3d   : > { %p3732_p3 = pnand %p3731_p2, %p3730_p0  ;;  %p3737_p10 = por %p3736_p7, %p3735_p5 }
  0x3f   : > { %p3733_p4 = pneg %p3732_p3  ;;  %p3739_p9 = por %p3738_p11, %p3737_p10 }
  0x41   : > { %p3740_p12 = pnand %p3739_p9, %p3733_p4 }
  0x43   : > { %3743 = shalt.err (!%p3740_p12)
}
  0x44   : > { %s3744_s3 = scalar_lea.vmem %s4218_s21, 256  ;;  %s4039_s22 = smov [#allocation8]  }
  0x45   : > { %p3745_p0 = scmp.ne.s32.totalorder %s4218_s21, %s3744_s3  ;;  %s3749_s17 = sshll.u32 %s4039_s22, 4  ;;  %s3750_s17 = int_to_ptr.vmem [resolvable:$false] %s3749_s17 }
  0x46   : > { %s3751_s23 = scalar_lea.vmem %s3750_s17, 512  ;;  %p3752_p6 = scmp.lt.s32.totalorder %s4218_s21, %s3750_s17 }
  0x47   : > { %p3747_p3 = pnand %p3745_p0, %p3731_p2  ;;  %p3753_p5 = scmp.lt.s32.totalorder %s3751_s23, %s3744_s3 }
  0x49   : > { %p3748_p1 = pneg %p3747_p3  ;;  %p3754_p7 = por %p3753_p5, %p3752_p6 }
  0x4b   : > { %p3755_p11 = pnand %p3754_p7, %p3748_p1 }
  0x4d   : > { %3758 = shalt.err (!%p3755_p11)
}
  0x4e   : > { %s5070_s6 = smov 128   ;;  %s5072_s24 = smov 8  }
  0x4f   : > { %3591 = dma.hbm_to_vmem [thread:$0]  (!%p4224_p13), %s4216_s26, 256, %s4218_s21, %s4228_s2, %s5070_s6, %s5070_s6, %s5072_s24  }
  0x50   : > { %s4260_s25 = sadd.s32 4294967295, %s4037_s14   ;;  %p2595_p1 = scmp.ge.s32.totalorder %s4037_s14, 1 }
  0x51   : > { %p5074_p6 = scmp.eq.s32.totalorder %s4260_s25, 0  ;;  %p267_p12 = scmp.lt.s32.totalorder %s4037_s14, 5 }
  0x52   : > { %s4042_s26 = smov [#allocation11]   ;;  %s2588_s27 = sadd.s32 4294967294, %s4037_s14  }
  0x53   : > { %p4271_p2 = por %p101_p8, %p5074_p6  ;;  %p4275_p4 = pnand %p2595_p1, %p267_p12 }
  0x54   : > { %s285_s21 = sshll.u32 %s4042_s26, 4  ;;  %s52_s18 = sadd.s32 1, %s4017_s9  ;;  %s286_s21 = int_to_ptr.vmem [resolvable:$true] %s285_s21 }
  0x55   : > { %s5109_s16 = scalar_select %p4271_p2, 1, 0 }
  0x56   : > { %s5110_s11 = scalar_select %p4275_p4, 1, 0 }
  0x57   : > { %p3581_p13 = pneg %p4275_p4  ;;  %s5112_s5 = sld [smem:[#allocation43_spill]] }
  0x59   : > { %p4283_p10 = pnand %p3581_p13, %p5074_p6 }
  0x5b   : > { %p3761_p0 = pneg %p4283_p10 }
  0x5d   : > { %s3759_s22 = scalar_lea.hbm %s5112_s5, 18432 }
  0x5e   : > { %p3760_p8 = scmp.ne.s32.totalorder %s5112_s5, %s3759_s22  ;;  %p3766_p7 = scmp.lt.u32.totalorder %s3759_s22, %s5112_s5 }
  0x60   : > { %p3762_p3 = pnand %p3761_p0, %p3760_p8 }
  0x62   : > { %p3763_p5 = pneg %p3762_p3 }
  0x64   : > { %p3768_p11 = pnand %p3766_p7, %p3763_p5 }
  0x66   : > { %3771 = shalt.err (!%p3768_p11)
}
  0x67   : > { %s3772_s24 = scalar_lea.vmem %s286_s21, 18432  ;;  %p3780_p9 = scmp.lt.s32.totalorder %s286_s21, %s286_s21 }
  0x68   : > { %p3773_p1 = scmp.ne.s32.totalorder %s286_s21, %s3772_s24  ;;  %p3781_p6 = scmp.lt.s32.totalorder %s3772_s24, %s3772_s24 }
  0x6a   : > { %p3775_p12 = pnand %p3773_p1, %p3761_p0  ;;  %p3782_p2 = por %p3781_p6, %p3780_p9 }
  0x6c   : > { %p3776_p13 = pneg %p3775_p12 }
  0x6e   : > { %p3783_p4 = pnand %p3782_p2, %p3776_p13 }
  0x70   : > { %3786 = shalt.err (!%p3783_p4)
}
  0x71   : > { %s5113_s20 = smov 8   ;;  %s5114_s3 = smov 128  }
  0x72   : > { %3584 = dma.hbm_to_vmem [thread:$0]  (!%p4283_p10), %s5112_s5, 18432, %s286_s21, [#allocation12], %s5114_s3, %s5114_s3, %s5113_s20  }
  0x73   : > { %p5115_p6 = scmp.eq.s32.totalorder %s4185_s7, 0  ;;  %p59_p9 = scmp.ne.s32.totalorder %s4017_s9, %s4013_s8 }
  0x74   : > { %p65_p2 = scmp.ne.s32.totalorder %s4013_s8, %s4009_s30  ;;  %p232_p4 = scmp.eq.s32.totalorder %s2588_s27, 3 }
  0x75   : > { %s4311_s6 = scalar_select %p5115_p6, %s4017_s9, %s52_s18  }
  0x76   : > { %s299_s24 = sand.u32 1, %s4017_s9   ;;  %p5117_p8 = scmp.eq.s32.totalorder %s4037_s14, 0 }
  0x77   : > { %5116 = sst [smem:[#allocation36_spill]] %s4311_s6  ;;  %p5118_p3 = scmp.eq.s32.totalorder %s4260_s25, 0 }
  0x78   : > { %p61_p0 = por %p5117_p8, %p59_p9  ;;  %p5120_p7 = scmp.eq.s32.totalorder %s4260_s25, 3 }
  0x79   : > { %p4322_p5 = por %p5118_p3, %p65_p2  ;;  %p4332_p10 = por %p232_p4, %p65_p2 }
  0x7a   : > { %p4328_p11 = por %p5120_p7, %p59_p9  ;;  %s2598_s21 = sshll.u32 %s299_s24, 7 }
  0x7b   : > { %s5122_s7 = scalar_select %p4332_p10, 1, 0 }
  0x7c   : > { %s5121_s22 = scalar_select %p4328_p11, 1, 0 }
  0x7d   : > { %5123 = sst [smem:[#allocation37_spill]] %s5122_s7  ;;  %s2637_s18 = sshll.u32 %s4029_s12, 4 }
  0x7e   : > { %s310_s27 = sadd.s32 %s2637_s18, %s4208_s4  ;;  %s303_s26 = scalar_lea.vmem [#allocation5], %s2598_s21 }
  0x7f   : > { %s313_s17 = sshll.u32 %s303_s26, 4  ;;  %s2602_s23 = sshll.u32 %s310_s27, 7  ;;  %s4338_s17 = int_to_ptr.vmem [resolvable:$true] %s313_s17 }
  0x80   : > { %s5124_s0 = sld [smem:[#allocation38_spill]]  ;;  %p5125_p1 = scmp.lt.s32.totalorder %s4037_s14, 4 }
  0x81   : > { %s4351_s21 = scalar_lea.sflag [#allocation6], %s299_s24 }
  0x82   : > { %p4347_p12 = pnand %p5125_p1, %p61_p0 }
  0x84   : > { %p3789_p6 = pneg %p4347_p12 }
  0x86   : > { %s4343_s13 = scalar_lea.hbm %s5124_s0, %s2602_s23  ;;  %s3792_s27 = scalar_lea.hbm %s5124_s0, 8192 }
  0x87   : > { %s3787_s18 = scalar_lea.hbm %s4343_s13, 2048  ;;  %p3793_p4 = scmp.lt.u32.totalorder %s4343_s13, %s5124_s0 }
  0x88   : > { %p3788_p13 = scmp.ne.s32.totalorder %s4343_s13, %s3787_s18  ;;  %p3794_p8 = scmp.lt.u32.totalorder %s3792_s27, %s3787_s18 }
  0x89   : > { %p3796_p3 = scmp.lt.u32.totalorder %s3787_s18, %s4343_s13 }
  0x8a   : > { %p3790_p9 = pnand %p3789_p6, %p3788_p13  ;;  %p3795_p0 = por %p3794_p8, %p3793_p4 }
  0x8c   : > { %p3791_p2 = pneg %p3790_p9  ;;  %p3797_p7 = por %p3796_p3, %p3795_p0 }
  0x8e   : > { %p3798_p1 = pnand %p3797_p7, %p3791_p2 }
  0x90   : > { %3801 = shalt.err (!%p3798_p1)
}
  0x91   : > { %s3802_s24 = scalar_lea.vmem %s4338_s17, 2048  ;;  %s4043_s1 = smov [#allocation5]  }
  0x92   : > { %p3803_p13 = scmp.ne.s32.totalorder %s4338_s17, %s3802_s24  ;;  %s3807_s5 = sshll.u32 %s4043_s1, 4  ;;  %s3808_s5 = int_to_ptr.vmem [resolvable:$false] %s3807_s5 }
  0x93   : > { %s3809_s26 = scalar_lea.vmem %s3808_s5, 4096  ;;  %p3810_p11 = scmp.lt.s32.totalorder %s4338_s17, %s3808_s5 }
  0x94   : > { %p3805_p9 = pnand %p3803_p13, %p3789_p6  ;;  %p3811_p4 = scmp.lt.s32.totalorder %s3809_s26, %s3802_s24 }
  0x96   : > { %p3806_p10 = pneg %p3805_p9  ;;  %p3812_p8 = por %p3811_p4, %p3810_p11 }
  0x98   : > { %p3813_p0 = pnand %p3812_p8, %p3806_p10 }
  0x9a   : > { %3816 = shalt.err (!%p3813_p0)
}
  0x9b   : > { %s5127_s18 = sld [smem:[#allocation24_spill]]  ;;  %s5128_s27 = sld [smem:[#allocation34_spill]] }
  0x9c   : > { %s5129_s23 = sld [smem:[#allocation23_spill]]  ;;  %s5130_s1 = sld [smem:[#allocation22_spill]] }
  0x9d   : > { %s5131_s24 = sld [smem:[#allocation33_spill]]  ;;  %p5133_p10 = scmp.lt.s32.totalorder %s4200_s19, 15 }
  0x9e   : > { %3588 = dma.hbm_to_vmem [thread:$0]  (!%p4347_p12), %s4343_s13, 2048, %s4338_s17, %s4351_s21, %s5114_s3, %s5114_s3, %s5113_s20  }
  0x9f   : > { %s5191_s19 = smov (!%p5133_p10, %s4200_s19), 15  ;;  %p5134_p3 = scmp.eq.s32.totalorder %s4037_s14, 0 }
  0xa0   : > { %p5135_p13 = scmp.eq.s32.totalorder %s4260_s25, 0  ;;  %s5137_s29 = sld [smem:[#allocation40_spill]] }
  0xa1   : > { %s124_s6 = sadd.s32 1, %s5127_s18  ;;  %p5132_p11 = scmp.lt.s32.totalorder %s5128_s27, 15 }
  0xa2   : > { %p131_p6 = scmp.ne.s32.totalorder %s5127_s18, %s5129_s23  ;;  %p137_p2 = scmp.ne.s32.totalorder %s5129_s23, %s5130_s1 }
  0xa3   : > { %s5189_s27 = smov (!%p5132_p11, %s5128_s27), 15  ;;  %s352_s26 = sand.u32 1, %s5127_s18  }
  0xa4   : > { %s120_s5 = ssub.s32 %s5189_s27, %s5191_s19  ;;  %p133_p7 = por %p131_p6, %p5134_p3 }
  0xa5   : > { %s121_s0 = sor.u32 %s120_s5, %s5131_s24  ;;  %p4399_p9 = por %p137_p2, %p5135_p13 }
  0xa6   : > { %p122_p1 = scmp.eq.s32.totalorder %s121_s0, 0  ;;  %s2609_s13 = sshll.u32 %s352_s26, 4 }
  0xa7   : > { %s5136_s12 = scalar_select %p4399_p9, 1, 0 }
  0xa8   : > { %s2611_s17 = sshll.u32 %s5189_s27, 1  ;;  %s5193_s18 = smov (!%p122_p1, %s5127_s18), %s124_s6 }
  0xa9   : > { %s364_s21 = sadd.s32 %s2611_s17, %s4208_s4  ;;  %s354_s10 = scalar_lea.vmem [#allocation10], %s2609_s13 }
  0xaa   : > { %s2613_s9 = sshll.u32 %s364_s21, 7  ;;  %s367_s23 = sshll.u32 %s354_s10, 4  ;;  %s4412_s23 = int_to_ptr.vmem [resolvable:$true] %s367_s23 }
  0xab   : > { %s5138_s7 = smov %s5137_s29  ;;  %s4410_s24 = scalar_lea.hbm %s5137_s29, %s2613_s9 }
  0xac   : > { %p5139_p12 = scmp.lt.s32.totalorder %s4037_s14, 4  ;;  %s3817_s4 = scalar_lea.hbm %s4410_s24, 256 }
  0xad   : > { %p3818_p8 = scmp.ne.s32.totalorder %s4410_s24, %s3817_s4  ;;  %s3822_s10 = scalar_lea.hbm %s5138_s7, 8192 }
  0xae   : > { %p4416_p4 = pnand %p5139_p12, %p133_p7  ;;  %p3823_p6 = scmp.lt.u32.totalorder %s4410_s24, %s5138_s7 }
  0xaf   : > { %p3824_p2 = scmp.lt.u32.totalorder %s3822_s10, %s3817_s4  ;;  %p3826_p7 = scmp.lt.u32.totalorder %s3817_s4, %s4410_s24 }
  0xb0   : > { %p3819_p0 = pneg %p4416_p4 }
  0xb1   : > { %p3825_p3 = por %p3824_p2, %p3823_p6 }
  0xb2   : > { %p3820_p11 = pnand %p3819_p0, %p3818_p8 }
  0xb3   : > { %p3827_p1 = por %p3826_p7, %p3825_p3 }
  0xb4   : > { %p3821_p10 = pneg %p3820_p11 }
  0xb6   : > { %p3828_p13 = pnand %p3827_p1, %p3821_p10 }
  0xb8   : > { %3831 = shalt.err (!%p3828_p13)
}
  0xb9   : > { %s3832_s5 = scalar_lea.vmem %s4412_s23, 256  ;;  %s4044_s26 = smov [#allocation10]  }
  0xba   : > { %p3833_p12 = scmp.ne.s32.totalorder %s4412_s23, %s3832_s5  ;;  %s3837_s13 = sshll.u32 %s4044_s26, 4  ;;  %s3838_s13 = int_to_ptr.vmem [resolvable:$false] %s3837_s13 }
  0xbb   : > { %s3839_s17 = scalar_lea.vmem %s3838_s13, 512  ;;  %p3840_p9 = scmp.lt.s32.totalorder %s4412_s23, %s3838_s13 }
  0xbc   : > { %p3835_p8 = pnand %p3833_p12, %p3819_p0  ;;  %p3841_p6 = scmp.lt.s32.totalorder %s3839_s17, %s3832_s5 }
  0xbe   : > { %p3836_p11 = pneg %p3835_p8  ;;  %p3842_p2 = por %p3841_p6, %p3840_p9 }
  0xc0   : > { %p3843_p3 = pnand %p3842_p2, %p3836_p11 }
  0xc2   : > { %3846 = shalt.err (!%p3843_p3)
}
  0xc3   : > { %3594 = dma.hbm_to_vmem [thread:$0]  (!%p4416_p4), %s4410_s24, 256, %s4412_s23, %s4228_s2, %s5114_s3, %s5114_s3, %s5113_s20  }
  0xc4   : > { %p5141_p0 = scmp.ne.s32.totalorder %s5110_s11, 0 }
  0xc5   : > { %s4452_s21 = sand.u32 (!%p5141_p0), 1, %s4013_s8  }
  0xc6   : > { %379 = sbr.rel (%p5141_p0) target bundleno = 966 (0x3c6), region = 44  ;;  %s2615_s1 = sshll.u32 (!%p5141_p0), %s4452_s21, 7 }
  0xc7   : > { %s382_s19 = scalar_lea.sflag (!%p5141_p0), [#allocation6], %s4452_s21  ;;  %s4458_s0 = scalar_lea.vmem (!%p5141_p0), [#allocation5], %s2615_s1 }
  0xcd   : > { %3960 = dma.done.wait (%p4322_p5), %s382_s19, 2048  }
  0xce   : > { %3962 = vsyncadd (%p4322_p5), %s382_s19, 4294965248  ;;  %s390_s2 = sand.u32 1, %s4260_s25   ;;  %s392_s11 = sand.u32 1, %s4001_s28  }
  0xcf   : > { %s4466_s20 = sshll.u32 %s392_s11, 4  ;;  %s391_s3 = scalar_lea.sflag [#allocation9], %s390_s2 }
  0xd0   : > { %s394_s23 = scalar_lea.vmem [#allocation8], %s4466_s20  ;;  %p5142_p9 = scmp.ne.s32.totalorder %s5109_s16, 0 }
  0xd2   : > { %3964 = dma.done.wait (%p5142_p9), %s391_s3, 256  }
  0xd3   : > { %3966 = vsyncadd (%p5142_p9), %s391_s3, 4294967040  ;;  %s5143_s24 = sld [smem:[#allocation23_spill]]  ;;  %p5144_p5 = scmp.ne.s32.totalorder %s5136_s12, 0 }
  0xd9   : > { %s401_s4 = sand.u32 1, %s5143_s24  }
  0xda   : > { %s4474_s15 = sshll.u32 %s401_s4, 4 }
  0xdb   : > { %s403_s29 = scalar_lea.vmem [#allocation10], %s4474_s15 }
  0xdc   : > { %3968 = dma.done.wait (%p5144_p5), %s391_s3, 256  }
  0xdd   : > { %3970 = vsyncadd (%p5144_p5), %s391_s3, 4294967040  ;;  %p5145_p4 = scmp.eq.s32.totalorder %s4260_s25, 0 }
  0xdf   : > { %3972 = dma.done.wait (%p5145_p4), [#allocation12], 18432   ;;  %p5146_p10 = pmov %p5145_p4 }
  0xe0   : > { %s2620_s16 = sshll.u32 %s4452_s21, 1  ;;  %v4045_v0 = vmov 0.0   ;;  %s5147_s9 = sld [smem:[#allocation41_spill]]  ;;  %v485_v3 = vld [vmem:[%s4458_s0] sm:$0xff]  ;;  %v486_v5 = vld [vmem:[%s4458_s0 + $0x8] sm:$0xff]  ;;  %v487_v6 = vld [vmem:[%s4458_s0 + $0x10] sm:$0xff] }
  0xe1   : > { %3974 = vsyncadd (%p5146_p10), [#allocation12], 4294948864  ;;  %465 = vst [vmem:[#allocation2] sm:$0x1] %v4045_v0  ;;  %s5148_s6 = sld [smem:[#allocation42_spill]]  ;;  %v488_v7 = vld [vmem:[%s4458_s0 + $0x18] sm:$0xff] }
  0xe2   : > { %466 = vst [vmem:[#allocation2 + $0x18] sm:$0x1] %v4045_v0  ;;  %467 = vst [vmem:[#allocation2 + $0x30] sm:$0x1] %v4045_v0  ;;  %v489_v11 = vld [vmem:[%s4458_s0 + $0x20] sm:$0xff]  ;;  %v490_v12 = vld [vmem:[%s4458_s0 + $0x28] sm:$0xff] }
  0xe3   : > { %468 = vst [vmem:[#allocation2 + $0x48] sm:$0x1] %v4045_v0  ;;  %469 = vst [vmem:[#allocation2 + $0x60] sm:$0x1] %v4045_v0  ;;  %v491_v13 = vld [vmem:[%s4458_s0 + $0x30] sm:$0xff]  ;;  %v492_v18 = vld [vmem:[%s4458_s0 + $0x38] sm:$0xff] }
  0xe4   : > { %470 = vst [vmem:[#allocation2 + $0x78] sm:$0x1] %v4045_v0  ;;  %471 = vst [vmem:[#allocation2 + $0x90] sm:$0x1] %v4045_v0  ;;  %v493_v19 = vld [vmem:[%s4458_s0 + $0x40] sm:$0xff]  ;;  %v494_v20 = vld [vmem:[%s4458_s0 + $0x48] sm:$0xff] }
  0xe5   : > { %472 = vst [vmem:[#allocation2 + $0xa8] sm:$0x1] %v4045_v0  ;;  %473 = vst [vmem:[#allocation2 + $0xc0] sm:$0x1] %v4045_v0  ;;  %v495_v25 = vld [vmem:[%s4458_s0 + $0x50] sm:$0xff]  ;;  %v496_v26 = vld [vmem:[%s4458_s0 + $0x58] sm:$0xff] }
  0xe6   : > { %474 = vst [vmem:[#allocation2 + $0xd8] sm:$0x1] %v4045_v0  ;;  %475 = vst [vmem:[#allocation2 + $0x11] sm:$0x1] %v4045_v0  ;;  %v4509_v1 = vld [vmem:[%s5147_s9] ss:$0 sm:$0xff] }
  0xe7   : > { %476 = vst [vmem:[#allocation2 + $0x29] sm:$0x1] %v4045_v0  ;;  %477 = vst [vmem:[#allocation2 + $0x41] sm:$0x1] %v4045_v0  ;;  %v4514_v2 = vld [vmem:[%s5148_s6] ss:$0 sm:$0xff]  ;;  %v507_v4 = vmul.f32 %v4509_v1, %v485_v3  ;;  %v508_v8 = vmul.f32 %v4509_v1, %v486_v5  ;;  %v509_v9 = vmul.f32 %v4509_v1, %v487_v6 }
  0xe8   : > { %478 = vst [vmem:[#allocation2 + $0x59] sm:$0x1] %v4045_v0  ;;  %479 = vst [vmem:[#allocation2 + $0x71] sm:$0x1] %v4045_v0  ;;  %v510_v10 = vmul.f32 %v4509_v1, %v488_v7  ;;  %v511_v15 = vmul.f32 %v4509_v1, %v489_v11  ;;  %v512_v16 = vmul.f32 %v4509_v1, %v490_v12  ;;  %v497_v27 = vld [vmem:[%s4458_s0 + $0x60] sm:$0xff]  ;;  %v498_v32 = vld [vmem:[%s4458_s0 + $0x68] sm:$0xff] }
  0xe9   : > { %480 = vst [vmem:[#allocation2 + $0x89] sm:$0x1] %v4045_v0  ;;  %481 = vst [vmem:[#allocation2 + $0xa1] sm:$0x1] %v4045_v0  ;;  %v529_v14 = vadd.f32 %v4514_v2, %v507_v4  ;;  %v513_v17 = vmul.f32 %v4509_v1, %v491_v13  ;;  %v530_v21 = vadd.f32 %v4514_v2, %v508_v8  ;;  %v499_v33 = vld [vmem:[%s4458_s0 + $0x70] sm:$0xff]  ;;  %v500_v34 = vld [vmem:[%s4458_s0 + $0x78] sm:$0xff] }
  0xea   : > { %482 = vst [vmem:[#allocation2 + $0xb9] sm:$0x1] %v4045_v0  ;;  %483 = vst [vmem:[#allocation2 + $0xd1] sm:$0x1] %v4045_v0  ;;  %v531_v22 = vadd.f32 %v4514_v2, %v509_v9  ;;  %v532_v23 = vadd.f32 %v4514_v2, %v510_v10  ;;  %v514_v24 = vmul.f32 %v4509_v1, %v492_v18  ;;  %s4566_s5 = scalar_lea.vmem [#allocation13], %s2615_s1  ;;  %s4570_s26 = scalar_lea.vmem [#allocation14], %s2620_s16 }
  0xeb   : > { %484 = vst [vmem:[#allocation2 + $0xe9] sm:$0x1] %v4045_v0  ;;  %546 = vst [vmem:[#allocation2 + $0x19] sm:$0xff] %v529_v14  ;;  %v533_v28 = vadd.f32 %v4514_v2, %v511_v15  ;;  %v534_v29 = vadd.f32 %v4514_v2, %v512_v16  ;;  %v535_v30 = vadd.f32 %v4514_v2, %v513_v17  ;;  %s5149_s13 = sld [smem:[#allocation27_spill]] }
  0xec   : > { %v515_v31 = vmul.f32 %v4509_v1, %v493_v19  ;;  %547 = vst [vmem:[#allocation2 + $0x21] sm:$0xff] %v530_v21  ;;  %548 = vst [vmem:[#allocation2 + $0x31] sm:$0xff] %v531_v22  ;;  %v536_v35 = vadd.f32 %v4514_v2, %v514_v24  ;;  %v516_v36 = vmul.f32 %v4509_v1, %v494_v20 }
  0xed   : > { %549 = vst [vmem:[#allocation2 + $0x39] sm:$0xff] %v532_v23  ;;  %v517_v37 = vmul.f32 %v4509_v1, %v495_v25  ;;  %v518_v38 = vmul.f32 %v4509_v1, %v496_v26  ;;  %550 = vst [vmem:[#allocation2 + $0x49] sm:$0xff] %v533_v28  ;;  %v519_v40 = vmul.f32 %v4509_v1, %v497_v27 }
  0xee   : > { %551 = vst [vmem:[#allocation2 + $0x51] sm:$0xff] %v534_v29  ;;  %552 = vst [vmem:[#allocation2 + $0x61] sm:$0xff] %v535_v30  ;;  %v537_v39 = vadd.f32 %v4514_v2, %v515_v31  ;;  %v520_v41 = vmul.f32 %v4509_v1, %v498_v32  ;;  %v521_v42 = vmul.f32 %v4509_v1, %v499_v33 }
  0xef   : > { %553 = vst [vmem:[#allocation2 + $0x69] sm:$0xff] %v536_v35  ;;  %v538_v43 = vadd.f32 %v4514_v2, %v516_v36  ;;  %v539_v44 = vadd.f32 %v4514_v2, %v517_v37  ;;  %v540_v45 = vadd.f32 %v4514_v2, %v518_v38  ;;  %v522_v46 = vmul.f32 %v4509_v1, %v500_v34 }
  0xf0   : > { %554 = vst [vmem:[#allocation2 + $0x79] sm:$0xff] %v537_v39  ;;  %v541_v47 = vadd.f32 %v4514_v2, %v519_v40  ;;  %v542_v48 = vadd.f32 %v4514_v2, %v520_v41  ;;  %v543_v49 = vadd.f32 %v4514_v2, %v521_v42 }
  0xf1   : > { %555 = vst [vmem:[#allocation2 + $0x81] sm:$0xff] %v538_v43  ;;  %556 = vst [vmem:[#allocation2 + $0x91] sm:$0xff] %v539_v44  ;;  %v544_v50 = vadd.f32 %v4514_v2, %v522_v46  ;;  %p2623_p7 = scmp.le.s32.totalorder %s5149_s13, 0 }
  0xf2   : > { %557 = vst [vmem:[#allocation2 + $0x99] sm:$0xff] %v540_v45  ;;  %558 = vst [vmem:[#allocation2 + $0xa9] sm:$0xff] %v541_v47  ;;  %v566_v51 = vld [vmem:[%s394_s23] sm:$0xff] (!%p2623_p7)  ;;  %v567_v52 = vld [vmem:[%s394_s23 + $0x8] sm:$0xff] (!%p2623_p7) }
  0xf3   : > { %559 = vst [vmem:[#allocation2 + $0xb1] sm:$0xff] %v542_v48  ;;  %560 = vst [vmem:[#allocation2 + $0xc1] sm:$0xff] %v543_v49  ;;  %565 = sbr.rel (%p2623_p7) target bundleno = 250 (0xfa), region = 64  ;;  %v568_v53 = vmul.f32 (!%p2623_p7), %v4509_v1, %v566_v51  ;;  %v569_v54 = vmul.f32 (!%p2623_p7), %v4509_v1, %v567_v52 }
  0xf4   : > { %561 = vst [vmem:[#allocation2 + $0xc9] sm:$0xff] %v544_v50 }
  0xf5   : > { %v570_v55 = vadd.f32 (!%p2623_p7), %v4514_v2, %v568_v53  ;;  %v571_v56 = vadd.f32 (!%p2623_p7), %v4514_v2, %v569_v54 }
  0xf7   : > { %572 = vst [vmem:[#allocation2 + $0x1] sm:$0xff] (!%p2623_p7), %v570_v55  ;;  %573 = vst [vmem:[#allocation2 + $0x9] sm:$0xff] (!%p2623_p7), %v571_v56 }
  0xfa PF: > { %s5150_s17 = sld [smem:[#allocation27_spill]] }
 0x100   : > { %p2624_p1 = scmp.ne.s32.totalorder %s5150_s17, 0 }
 0x101   : > { %v4046_v57 = vmov (!%p2624_p1), 0.0  }
 0x102   : > { %577 = sbr.rel (%p2624_p1) target bundleno = 265 (0x109), region = 68  ;;  %578 = vst [vmem:[#allocation2 + $0x1] sm:$0xff] (!%p2624_p1), %v4046_v57  ;;  %579 = vst [vmem:[#allocation2 + $0x9] sm:$0xff] (!%p2624_p1), %v4046_v57 }
 0x109 PF: > { %s5151_s1 = sld [smem:[#allocation27_spill]] }
 0x10f   : > { %p2625_p13 = scmp.ge.s32.totalorder %s5151_s1, 1 }
 0x110   : > { %v584_v58 = vld [vmem:[%s403_s29] sm:$0xff] (!%p2625_p13)  ;;  %v585_v59 = vld [vmem:[%s403_s29 + $0x8] sm:$0xff] (!%p2625_p13) }
 0x111   : > { %583 = sbr.rel (%p2625_p13) target bundleno = 280 (0x118), region = 72  ;;  %v586_v60 = vmul.f32 (!%p2625_p13), %v4509_v1, %v584_v58  ;;  %v587_v61 = vmul.f32 (!%p2625_p13), %v4509_v1, %v585_v59 }
 0x113   : > { %v588_v62 = vadd.f32 (!%p2625_p13), %v4514_v2, %v586_v60  ;;  %v589_v63 = vadd.f32 (!%p2625_p13), %v4514_v2, %v587_v61 }
 0x115   : > { %591 = vst [vmem:[#allocation2 + $0xd9] sm:$0xff] (!%p2625_p13), %v588_v62  ;;  %592 = vst [vmem:[#allocation2 + $0xe1] sm:$0xff] (!%p2625_p13), %v589_v63 }
 0x118 PF: > { %s5152_s19 = sld [smem:[#allocation27_spill]] }
 0x11e   : > { %p2626_p12 = scmp.ne.s32.totalorder %s5152_s19, 1 }
 0x11f   : > { %v4047_v3 = vmov (!%p2626_p12), 0.0  }
 0x120   : > { %596 = sbr.rel (%p2626_p12) target bundleno = 295 (0x127), region = 76  ;;  %598 = vst [vmem:[#allocation2 + $0xd9] sm:$0xff] (!%p2626_p12), %v4047_v3  ;;  %599 = vst [vmem:[#allocation2 + $0xe1] sm:$0xff] (!%p2626_p12), %v4047_v3 }
 0x127 PF: > { %v760_v4 = vld [vmem:[#allocation11 + $0x80] sm:$0xff]  ;;  %v761_v5 = vld [vmem:[#allocation11 + $0x88] sm:$0xff]  ;;  %v762_v2 = vld [vmem:[#allocation11 + $0x90] sm:$0xff]  ;;  %vm4049_vm0 = vmmov 0   ;;  %s5153_s0 = sld [smem:[#allocation27_spill]]  ;;  %s5154_s2 = sld [smem:[#allocation28_spill]] }
 0x128   : > { %v776_v6 = vld [vmem:[#allocation11 + $0x100] sm:$0xff]  ;;  %v3247_v7 = vpack.c.bf16 %v761_v5, %v760_v4  ;;  %v777_v8 = vld [vmem:[#allocation11 + $0x108] sm:$0xff]  ;;  %v763_v12 = vld [vmem:[#allocation11 + $0x98] sm:$0xff]  ;;  %s2389_s24 = sshll.u32 %s4566_s5, 4  ;;  %s5155_s29 = sld [smem:[#allocation44_spill]]  ;;  %s4936_s24 = int_to_ptr.vmem [resolvable:$true] %s2389_s24 }
 0x129   : > { %v744_v1 = vld [vmem:[#allocation11] sm:$0xff]  ;;  %v745_v9 = vld [vmem:[#allocation11 + $0x8] sm:$0xff]  ;;  %v3279_v10 = vpack.c.bf16 %v777_v8, %v776_v6  ;;  %v778_v13 = vld [vmem:[#allocation11 + $0x110] sm:$0xff]  ;;  %v3251_v14 = vpack.c.bf16 %v763_v12, %v762_v2  ;;  %s2368_s25 = scalar_lea.sflag [#allocation7], %s4452_s21  ;;  %s3847_s9 = scalar_lea.vmem %s4936_s24, 2048 }
 0x12a   : > { %v3249_v11 = vpack.c.bf16 %v745_v9, %v744_v1  ;;  %3248 = vmatprep.subr.bf16.mxu0 %v3247_v7  ;;  %v779_v15 = vld [vmem:[#allocation11 + $0x118] sm:$0xff]  ;;  %v746_v16 = vld [vmem:[#allocation11 + $0x10] sm:$0xff]  ;;  %v764_v20 = vld [vmem:[#allocation11 + $0xa0] sm:$0xff]  ;;  %p3848_p8 = scmp.ne.s32.totalorder %s4936_s24, %s3847_s9  ;;  %p5157_p11 = scmp.ne.s32.totalorder %s5121_s22, 0 }
 0x12b   : > { %v747_v17 = vld [vmem:[#allocation11 + $0x18] sm:$0xff]  ;;  %3280 = vmatprep.subr.bf16.mxu1 %v3279_v10  ;;  %v3283_v18 = vpack.c.bf16 %v779_v15, %v778_v13  ;;  %v765_v21 = vld [vmem:[#allocation11 + $0xa8] sm:$0xff]  ;;  %v780_v22 = vld [vmem:[#allocation11 + $0x120] sm:$0xff]  ;;  %s4051_s10 = smov [#allocation13]  }
 0x12c   : > { %3250 = vmatpush3.bf16.msra.mxu0 %v3249_v11  ;;  %v3253_v19 = vpack.c.bf16 %v747_v17, %v746_v16  ;;  %3282 = vmatpush3.bf16.msra.mxu1 %v3279_v10  ;;  %v3255_v23 = vpack.c.bf16 %v765_v21, %v764_v20  ;;  %v781_v24 = vld [vmem:[#allocation11 + $0x128] sm:$0xff]  ;;  %v748_v25 = vld [vmem:[#allocation11 + $0x20] sm:$0xff]  ;;  %v766_v28 = vld [vmem:[#allocation11 + $0xb0] sm:$0xff]  ;;  %p3849_p6 = pnand %p3848_p8, %p5157_p11  ;;  %s3851_s27 = sshll.u32 %s4051_s10, 4  ;;  %s3852_s27 = int_to_ptr.vmem [resolvable:$false] %s3851_s27 }
 0x12d   : > { %3252 = vmatprep.subr.bf16.mxu0 %v3251_v14  ;;  %v749_v26 = vld [vmem:[#allocation11 + $0x28] sm:$0xff]  ;;  %3284 = vmatprep.subr.bf16.mxu1 %v3283_v18  ;;  %v3287_v27 = vpack.c.bf16 %v781_v24, %v780_v22  ;;  %v767_v29 = vld [vmem:[#allocation11 + $0xb8] sm:$0xff]  ;;  %v782_v30 = vld [vmem:[#allocation11 + $0x130] sm:$0xff]  ;;  %s2638_s11 = sshll.u32 %s5153_s0, 4  ;;  %s2631_s20 = sshll.u32 %s5154_s2, 5 }
 0x12e   : > { %v783_v31 = vld [vmem:[#allocation11 + $0x138] sm:$0xff]  ;;  %v3257_v32 = vpack.c.bf16 %v749_v26, %v748_v25  ;;  %v3259_v33 = vpack.c.bf16 %v767_v29, %v766_v28  ;;  %v750_v34 = vld [vmem:[#allocation11 + $0x30] sm:$0xff]  ;;  %v768_v37 = vld [vmem:[#allocation11 + $0xc0] sm:$0xff]  ;;  %s2386_s3 = sadd.s32 %s2638_s11, %s2631_s20  ;;  %s5156_s16 = smov %s5155_s29 }
 0x12f   : > { %v751_v35 = vld [vmem:[#allocation11 + $0x38] sm:$0xff]  ;;  %v3291_v36 = vpack.c.bf16 %v783_v31, %v782_v30  ;;  %v769_v38 = vld [vmem:[#allocation11 + $0xc8] sm:$0xff]  ;;  %v784_v39 = vld [vmem:[#allocation11 + $0x140] sm:$0xff]  ;;  %s2632_s23 = sshll.u32 %s2386_s3, 7  ;;  %p3850_p2 = pneg %p3849_p6 }
 0x130   : > { %3254 = vmatpush3.bf16.msra.mxu0 %v3253_v19  ;;  %3286 = vmatpush3.bf16.msra.mxu1 %v3283_v18  ;;  %v785_v40 = vld [vmem:[#allocation11 + $0x148] sm:$0xff]  ;;  %v3261_v41 = vpack.c.bf16 %v751_v35, %v750_v34  ;;  %v3263_v42 = vpack.c.bf16 %v769_v38, %v768_v37  ;;  %v752_v43 = vld [vmem:[#allocation11 + $0x40] sm:$0xff]  ;;  %v770_v46 = vld [vmem:[#allocation11 + $0xd0] sm:$0xff]  ;;  %s4934_s12 = scalar_lea.hbm %s5155_s29, %s2632_s23  ;;  %s3853_s6 = scalar_lea.vmem %s3852_s27, 4096 }
 0x131   : > { %3256 = vmatprep.subr.bf16.mxu0 %v3255_v23  ;;  %3288 = vmatprep.subr.bf16.mxu1 %v3287_v27  ;;  %v753_v44 = vld [vmem:[#allocation11 + $0x48] sm:$0xff]  ;;  %v3295_v45 = vpack.c.bf16 %v785_v40, %v784_v39  ;;  %v771_v47 = vld [vmem:[#allocation11 + $0xd8] sm:$0xff]  ;;  %v786_v48 = vld [vmem:[#allocation11 + $0x150] sm:$0xff]  ;;  %p3854_p3 = scmp.lt.s32.totalorder %s4936_s24, %s3852_s27  ;;  %p3855_p0 = scmp.lt.s32.totalorder %s3853_s6, %s3847_s9 }
 0x132   : > { %v787_v49 = vld [vmem:[#allocation11 + $0x158] sm:$0xff]  ;;  %v3265_v50 = vpack.c.bf16 %v753_v44, %v752_v43  ;;  %v3267_v53 = vpack.c.bf16 %v771_v47, %v770_v46  ;;  %v754_v54 = vld [vmem:[#allocation11 + $0x50] sm:$0xff]  ;;  %v772_v57 = vld [vmem:[#allocation11 + $0xe0] sm:$0xff] }
 0x133   : > { %v632_v51 = vld [vmem:[#allocation2 + $0x1] sm:$0xff]  ;;  %v3299_v56 = vpack.c.bf16 %v787_v49, %v786_v48  ;;  %v773_v58 = vld [vmem:[#allocation11 + $0xe8] sm:$0xff]  ;;  %v788_v59 = vld [vmem:[#allocation11 + $0x160] sm:$0xff]  ;;  %p3856_p9 = por %p3855_p0, %p3854_p3 }
 0x134   : > { %3258 = vmatpush3.bf16.msra.mxu0 %v3257_v32  ;;  %3290 = vmatpush3.bf16.msra.mxu1 %v3287_v27  ;;  %v664_v52 = vld [vmem:[#allocation2 + $0x2] sm:$0xff]  ;;  %v789_v60 = vld [vmem:[#allocation11 + $0x168] sm:$0xff]  ;;  %v3271_v62 = vpack.c.bf16 %v773_v58, %v772_v57  ;;  %v756_v63 = vld [vmem:[#allocation11 + $0x60] sm:$0xff] }
 0x135   : > { %3260 = vmatprep.subr.bf16.mxu0 %v3259_v33  ;;  %3292 = vmatprep.subr.bf16.mxu1 %v3291_v36  ;;  %v755_v55 = vld [vmem:[#allocation11 + $0x58] sm:$0xff]  ;;  %v757_v3 = vld [vmem:[#allocation11 + $0x68] sm:$0xff]  ;;  %v3303_v4 = vpack.c.bf16 %v789_v60, %v788_v59  ;;  %v774_v5 = vld [vmem:[#allocation11 + $0xf0] sm:$0xff]  ;;  %p3857_p5 = pnand %p3856_p9, %p3850_p2 }
 0x136   : > { %856 = vmatprep.mubr.f32.mxu0 %v632_v51  ;;  %3041 = vmatprep.mubr.f32.mxu1 %v664_v52  ;;  %v3269_v61 = vpack.c.bf16 %v755_v55, %v754_v54  ;;  %v775_v6 = vld [vmem:[#allocation11 + $0xf8] sm:$0xff]  ;;  %v790_v7 = vld [vmem:[#allocation11 + $0x170] sm:$0xff]  ;;  %v3273_v1 = vpack.c.bf16 %v757_v3, %v756_v63  ;;  %v1259_v12 = vld [vmem:[#allocation11 + $0x200] sm:$0xff] }
 0x137   : > { %v791_v8 = vld [vmem:[#allocation11 + $0x178] sm:$0xff]  ;;  %v3275_v9 = vpack.c.bf16 %v775_v6, %v774_v5  ;;  %v758_v10 = vld [vmem:[#allocation11 + $0x70] sm:$0xff]  ;;  %v1260_v13 = vld [vmem:[#allocation11 + $0x208] sm:$0xff] }
 0x138   : > { %3262 = vmatpush3.bf16.msra.mxu0 %v3261_v41  ;;  %3294 = vmatpush3.bf16.msra.mxu1 %v3291_v36  ;;  %v759_v11 = vld [vmem:[#allocation11 + $0x78] sm:$0xff]  ;;  %v3307_v2 = vpack.c.bf16 %v791_v8, %v790_v7  ;;  %v3311_v15 = vpack.c.bf16 %v1260_v13, %v1259_v12  ;;  %v1243_v16 = vld [vmem:[#allocation11 + $0x180] sm:$0xff]  ;;  %v1244_v17 = vld [vmem:[#allocation11 + $0x188] sm:$0xff] }
 0x139   : > { %3264 = vmatprep.subr.bf16.mxu0 %v3263_v42  ;;  %3296 = vmatprep.subr.bf16.mxu1 %v3295_v45  ;;  %v3277_v14 = vpack.c.bf16 %v759_v11, %v758_v10  ;;  %v1261_v18 = vld [vmem:[#allocation11 + $0x210] sm:$0xff]  ;;  %v1262_v19 = vld [vmem:[#allocation11 + $0x218] sm:$0xff]  ;;  %v3313_v22 = vpack.c.bf16 %v1244_v17, %v1243_v16  ;;  %v1263_v28 = vld [vmem:[#allocation11 + $0x220] sm:$0xff] }
 0x13a   : > { %v600_v20 = vld [vmem:[#allocation2] sm:$0xff]  ;;  %v665_v21 = vld [vmem:[#allocation2 + $0xa] sm:$0xff]  ;;  %v3315_v25 = vpack.c.bf16 %v1262_v19, %v1261_v18  ;;  %v1264_v29 = vld [vmem:[#allocation11 + $0x228] sm:$0xff] }
 0x13b   : > { %v633_v23 = vld [vmem:[#allocation2 + $0x9] sm:$0xff]  ;;  %v4592_v24 = vld [vmem:[#allocation2 + $0x1a] sm:$0xff]  ;;  %v4599_v34 = vld [vmem:[#allocation2 + $0x32] sm:$0xff]  ;;  %v3319_v37 = vpack.c.bf16 %v1264_v29, %v1263_v28 }
 0x13c   : > { %3266 = vmatpush3.bf16.msra.mxu0 %v3265_v50  ;;  %3298 = vmatpush3.bf16.msra.mxu1 %v3295_v45  ;;  %v1245_v26 = vld [vmem:[#allocation11 + $0x190] sm:$0xff]  ;;  %v1246_v27 = vld [vmem:[#allocation11 + $0x198] sm:$0xff]  ;;  %v1247_v35 = vld [vmem:[#allocation11 + $0x1a0] sm:$0xff] }
 0x13d   : > { %3268 = vmatprep.subr.bf16.mxu0 %v3267_v53  ;;  %3300 = vmatprep.subr.bf16.mxu1 %v3299_v56  ;;  %v601_v30 = vld [vmem:[#allocation2 + $0x8] sm:$0xff]  ;;  %v4596_v32 = vld [vmem:[#allocation2 + $0x19] sm:$0xff]  ;;  %v3317_v33 = vpack.c.bf16 %v1246_v27, %v1245_v26  ;;  %v1791_v39 = vld [vmem:[#allocation11 + $0x380] sm:$0xff] }
 0x13e   : > { %v4594_v31 = vld [vmem:[#allocation2 + $0x22] sm:$0xff]  ;;  %v1248_v36 = vld [vmem:[#allocation11 + $0x1a8] sm:$0xff]  ;;  %v1775_v43 = vld [vmem:[#allocation11 + $0x300] sm:$0xff] }
 0x13f   : > { %v1265_v38 = vld [vmem:[#allocation11 + $0x230] sm:$0xff]  ;;  %v1792_v40 = vld [vmem:[#allocation11 + $0x388] sm:$0xff]  ;;  %v1266_v41 = vld [vmem:[#allocation11 + $0x238] sm:$0xff]  ;;  %v3321_v49 = vpack.c.bf16 %v1248_v36, %v1247_v35 }
 0x140   : > { %3270 = vmatpush3.bf16.msra.mxu0 %v3269_v61  ;;  %3302 = vmatpush3.bf16.msra.mxu1 %v3299_v56  ;;  %v3375_v42 = vpack.c.bf16 %v1792_v40, %v1791_v39  ;;  %v1776_v44 = vld [vmem:[#allocation11 + $0x308] sm:$0xff]  ;;  %v1793_v46 = vld [vmem:[#allocation11 + $0x390] sm:$0xff]  ;;  %v1794_v47 = vld [vmem:[#allocation11 + $0x398] sm:$0xff]  ;;  %v3323_v52 = vpack.c.bf16 %v1266_v41, %v1265_v38 }
 0x141   : > { %3272 = vmatprep.subr.bf16.mxu0 %v3271_v62  ;;  %3304 = vmatprep.subr.bf16.mxu1 %v3303_v4  ;;  %v4603_v45 = vld [vmem:[#allocation2 + $0x18] sm:$0xff]  ;;  %v4608_v50 = vld [vmem:[#allocation2 + $0x21] sm:$0xff]  ;;  %v4610_v51 = vld [vmem:[#allocation2 + $0x4a] sm:$0xff]  ;;  %v3377_v56 = vpack.c.bf16 %v1776_v44, %v1775_v43  ;;  %v3379_v58 = vpack.c.bf16 %v1794_v47, %v1793_v46 }
 0x142   : > { %v4606_v48 = vld [vmem:[#allocation2 + $0x3a] sm:$0xff]  ;;  %v1250_v54 = vld [vmem:[#allocation11 + $0x1b8] sm:$0xff]  ;;  %v1267_v55 = vld [vmem:[#allocation11 + $0x240] sm:$0xff] }
 0x143   : > { %v1249_v53 = vld [vmem:[#allocation11 + $0x1b0] sm:$0xff]  ;;  %v1268_v57 = vld [vmem:[#allocation11 + $0x248] sm:$0xff]  ;;  %v1778_v60 = vld [vmem:[#allocation11 + $0x318] sm:$0xff] }
 0x144   : > { %3274 = vmatpush3.bf16.msra.mxu0 %v3273_v1  ;;  %3306 = vmatpush3.bf16.msra.mxu1 %v3303_v4  ;;  %v1777_v59 = vld [vmem:[#allocation11 + $0x310] sm:$0xff]  ;;  %v1795_v62 = vld [vmem:[#allocation11 + $0x3a0] sm:$0xff]  ;;  %v1796_v63 = vld [vmem:[#allocation11 + $0x3a8] sm:$0xff]  ;;  %v3325_v4 = vpack.c.bf16 %v1250_v54, %v1249_v53  ;;  %v3327_v7 = vpack.c.bf16 %v1268_v57, %v1267_v55 }
 0x145   : > { %3276 = vmatprep.subr.bf16.mxu0 %v3275_v9  ;;  %3308 = vmatprep.subr.bf16.mxu1 %v3307_v2  ;;  %v4615_v61 = vld [vmem:[#allocation2 + $0x20] sm:$0xff]  ;;  %v4618_v3 = vld [vmem:[#allocation2 + $0x52] sm:$0xff]  ;;  %v3381_v10 = vpack.c.bf16 %v1778_v60, %v1777_v59  ;;  %v1270_v11 = vld [vmem:[#allocation11 + $0x258] sm:$0xff] }
 0x146   : > { %v4620_v5 = vld [vmem:[#allocation2 + $0x31] sm:$0xff]  ;;  %v4622_v6 = vld [vmem:[#allocation2 + $0x62] sm:$0xff]  ;;  %v4632_v19 = vld [vmem:[#allocation2 + $0x39] sm:$0xff] }
 0x147   : > { %v1251_v8 = vld [vmem:[#allocation11 + $0x1c0] sm:$0xff]  ;;  %v1252_v1 = vld [vmem:[#allocation11 + $0x1c8] sm:$0xff]  ;;  %v1269_v9 = vld [vmem:[#allocation11 + $0x250] sm:$0xff] }
 0x148   : > { %3278 = vmatpush3.bf16.msra.mxu0 %v3277_v14  ;;  %3310 = vmatpush3.bf16.msra.mxu1 %v3307_v2  ;;  %v3383_v2 = vpack.c.bf16 %v1796_v63, %v1795_v62  ;;  %v1779_v12 = vld [vmem:[#allocation11 + $0x320] sm:$0xff]  ;;  %v1780_v13 = vld [vmem:[#allocation11 + $0x328] sm:$0xff]  ;;  %v1798_v16 = vld [vmem:[#allocation11 + $0x3b8] sm:$0xff]  ;;  %v3329_v18 = vpack.c.bf16 %v1252_v1, %v1251_v8 }
 0x149   : > { %3312 = vmatprep.subr.bf16.mxu1 %v3311_v15  ;;  %3376 = vmatprep.subr.bf16.mxu0 %v3375_v42  ;;  %v4627_v14 = vld [vmem:[#allocation2 + $0x30] sm:$0xff]  ;;  %v1797_v15 = vld [vmem:[#allocation11 + $0x3b0] sm:$0xff]  ;;  %v3385_v26 = vpack.c.bf16 %v1780_v13, %v1779_v12  ;;  %v1272_v27 = vld [vmem:[#allocation11 + $0x268] sm:$0xff] }
 0x14a   : > { %v4630_v17 = vld [vmem:[#allocation2 + $0x6a] sm:$0xff]  ;;  %v3387_v28 = vpack.c.bf16 %v1798_v16, %v1797_v15  ;;  %v1781_v29 = vld [vmem:[#allocation11 + $0x330] sm:$0xff]  ;;  %v1800_v36 = vld [vmem:[#allocation11 + $0x3c8] sm:$0xff] }
 0x14b   : > { %857 = vmatmul.mubr.f32.vlgmr.msra.gmra.mrb[0].mxu0 %v600_v20  ;;  %3042 = vmatmul.mubr.f32.vlgmr.msra.gmra.mrb[0].mxu1 %v665_v21  ;;  %v4634_v20 = vld [vmem:[#allocation2 + $0x7a] sm:$0xff]  ;;  %v3331_v21 = vpack.c.bf16 %v1270_v11, %v1269_v9  ;;  %v1799_v35 = vld [vmem:[#allocation11 + $0x3c0] sm:$0xff]  ;;  %v1274_v47 = vld [vmem:[#allocation11 + $0x278] sm:$0xff] }
 0x14c   : > { %861 = vmatprep.mubr.f32.mxu0 %v633_v23  ;;  %3314 = vmatpush3.bf16.msra.mxu1 %v3313_v22  ;;  %v1253_v22 = vld [vmem:[#allocation11 + $0x1d0] sm:$0xff]  ;;  %v1254_v23 = vld [vmem:[#allocation11 + $0x1d8] sm:$0xff]  ;;  %v4646_v40 = vld [vmem:[#allocation2 + $0x92] sm:$0xff] }
 0x14d   : > { %3044 = vmatprep.mubr.f32.mxu1 %v4592_v24  ;;  %3316 = vmatprep.subr.bf16.mxu1 %v3315_v25  ;;  %v1271_v25 = vld [vmem:[#allocation11 + $0x260] sm:$0xff]  ;;  %v3333_v38 = vpack.c.bf16 %v1254_v23, %v1253_v22  ;;  %v1256_v43 = vld [vmem:[#allocation11 + $0x1e8] sm:$0xff]  ;;  %v1273_v44 = vld [vmem:[#allocation11 + $0x270] sm:$0xff] }
 0x14e   : > { %3378 = vmatpush3.bf16.msra.mxu0 %v3377_v56  ;;  %v4644_v39 = vld [vmem:[#allocation2 + $0x49] sm:$0xff]  ;;  %v3335_v41 = vpack.c.bf16 %v1272_v27, %v1271_v25  ;;  %v1784_v53 = vld [vmem:[#allocation11 + $0x348] sm:$0xff]  ;;  %v1801_v55 = vld [vmem:[#allocation11 + $0x3d0] sm:$0xff]  ;;  %v3339_v62 = vpack.c.bf16 %v1274_v47, %v1273_v44 }
 0x14f   : > { %862 = vmatmul.mubr.f32.gmra.mrb[2].mxu0 %v601_v30  ;;  %3045 = vmatmul.mubr.f32.gmra.mrb[2].mxu1 %v4594_v31  ;;  %v1782_v30 = vld [vmem:[#allocation11 + $0x338] sm:$0xff]  ;;  %v1255_v42 = vld [vmem:[#allocation11 + $0x1e0] sm:$0xff]  ;;  %v4654_v57 = vld [vmem:[#allocation2 + $0x9a] sm:$0xff] }
 0x150   : > { %866 = vmatprep.mubr.f32.mxu0 %v4596_v32  ;;  %3318 = vmatpush3.bf16.msra.mxu1 %v3317_v33  ;;  %v4639_v33 = vld [vmem:[#allocation2 + $0x38] sm:$0xff]  ;;  %v3389_v46 = vpack.c.bf16 %v1782_v30, %v1781_v29  ;;  %v4651_v54 = vld [vmem:[#allocation2 + $0x48] sm:$0xff]  ;;  %v1257_v63 = vld [vmem:[#allocation11 + $0x1f0] sm:$0xff] }
 0x151   : > { %3047 = vmatprep.mubr.f32.mxu1 %v4599_v34  ;;  %3320 = vmatprep.subr.bf16.mxu1 %v3319_v37  ;;  %v4642_v37 = vld [vmem:[#allocation2 + $0x82] sm:$0xff]  ;;  %v4656_v59 = vld [vmem:[#allocation2 + $0x51] sm:$0xff] }
 0x152   : > { %3380 = vmatprep.subr.bf16.mxu0 %v3379_v58  ;;  %v1802_v56 = vld [vmem:[#allocation11 + $0x3d8] sm:$0xff]  ;;  %v3337_v58 = vpack.c.bf16 %v1256_v43, %v1255_v42  ;;  %v1785_v8 = vld [vmem:[#allocation11 + $0x350] sm:$0xff]  ;;  %v1276_v11 = vld [vmem:[#allocation11 + $0x288] sm:$0xff] }
 0x153   : > { %867 = vmatmul.mubr.f32.gmra.mrb[4].mxu0 %v4603_v45  ;;  %3048 = vmatmul.mubr.f32.gmra.mrb[4].mxu1 %v4606_v48  ;;  %v4658_v60 = vld [vmem:[#allocation2 + $0xaa] sm:$0xff]  ;;  %v3395_v1 = vpack.c.bf16 %v1802_v56, %v1801_v55  ;;  %v1804_v13 = vld [vmem:[#allocation11 + $0x3e8] sm:$0xff]  ;;  %v1277_v27 = vld [vmem:[#allocation11 + $0x290] sm:$0xff] }
 0x154   : > { %871 = vmatprep.mubr.f32.mxu0 %v4608_v50  ;;  %3322 = vmatpush3.bf16.msra.mxu1 %v3321_v49  ;;  %v3391_v49 = vpack.c.bf16 %v1800_v36, %v1799_v35  ;;  %v1786_v9 = vld [vmem:[#allocation11 + $0x358] sm:$0xff]  ;;  %v1803_v12 = vld [vmem:[#allocation11 + $0x3e0] sm:$0xff]  ;;  %v4673_v29 = vld [vmem:[#allocation2 + $0x60] sm:$0xff] }
 0x155   : > { %3050 = vmatprep.mubr.f32.mxu1 %v4610_v51  ;;  %3324 = vmatprep.subr.bf16.mxu1 %v3323_v52  ;;  %v1783_v52 = vld [vmem:[#allocation11 + $0x340] sm:$0xff]  ;;  %v3399_v25 = vpack.c.bf16 %v1804_v13, %v1803_v12  ;;  %v1805_v30 = vld [vmem:[#allocation11 + $0x3f0] sm:$0xff]  ;;  %v1806_v35 = vld [vmem:[#allocation11 + $0x3f8] sm:$0xff] }
 0x156   : > { %3382 = vmatpush3.bf16.msra.mxu0 %v3381_v10  ;;  %v1275_v10 = vld [vmem:[#allocation11 + $0x280] sm:$0xff]  ;;  %v3403_v43 = vpack.c.bf16 %v1806_v35, %v1805_v30  ;;  %v1790_v44 = vld [vmem:[#allocation11 + $0x378] sm:$0xff]  ;;  %v1280_v47 = vld [vmem:[#allocation11 + $0x2a8] sm:$0xff] }
 0x157   : > { %872 = vmatmul.mubr.f32.gmra.mrb[6].mxu0 %v4615_v61  ;;  %3051 = vmatmul.mubr.f32.gmra.mrb[6].mxu1 %v4618_v3  ;;  %v4666_v15 = vld [vmem:[#allocation2 + $0xb2] sm:$0xff]  ;;  %v3343_v23 = vpack.c.bf16 %v1276_v11, %v1275_v10  ;;  %v4676_v36 = vld [vmem:[#allocation2 + $0x69] sm:$0xff]  ;;  %v1281_v55 = vld [vmem:[#allocation11 + $0x2b0] sm:$0xff] }
 0x158   : > { %876 = vmatprep.mubr.f32.mxu0 %v4620_v5  ;;  %3326 = vmatpush3.bf16.msra.mxu1 %v3325_v4  ;;  %v1258_v4 = vld [vmem:[#allocation11 + $0x1f8] sm:$0xff]  ;;  %v1787_v22 = vld [vmem:[#allocation11 + $0x360] sm:$0xff]  ;;  %v4708_v10 = vld [vmem:[#allocation2 + $0x99] sm:$0xff] }
 0x159   : > { %3053 = vmatprep.mubr.f32.mxu1 %v4622_v6  ;;  %3328 = vmatprep.subr.bf16.mxu1 %v3327_v7  ;;  %v3393_v7 = vpack.c.bf16 %v1784_v53, %v1783_v52  ;;  %v3341_v16 = vpack.c.bf16 %v1258_v4, %v1257_v63  ;;  %v1282_v56 = vld [vmem:[#allocation11 + $0x2b8] sm:$0xff]  ;;  %v1284_v63 = vld [vmem:[#allocation11 + $0x2c8] sm:$0xff]  ;;  %v1287_v12 = vld [vmem:[#allocation11 + $0x2e0] sm:$0xff] }
 0x15a   : > { %3384 = vmatprep.subr.bf16.mxu0 %v3383_v2  ;;  %v4663_v2 = vld [vmem:[#allocation2 + $0x50] sm:$0xff]  ;;  %v1288_v13 = vld [vmem:[#allocation11 + $0x2e8] sm:$0xff] }
 0x15b   : > { %877 = vmatmul.mubr.f32.gmra.mrb[8].mxu0 %v4627_v14  ;;  %3054 = vmatmul.mubr.f32.gmra.mrb[8].mxu1 %v4630_v17  ;;  %v4700_v4 = vld [vmem:[#allocation2 + $0x91] sm:$0xff] }
 0x15c   : > { %881 = vmatprep.mubr.f32.mxu0 %v4632_v19  ;;  %3330 = vmatpush3.bf16.msra.mxu1 %v3329_v18  ;;  %v4668_v18 = vld [vmem:[#allocation2 + $0x61] sm:$0xff]  ;;  %v1807_v30 = vld [vmem:[#allocation11 + $0x400] sm:$0xff]  ;;  %v1808_v35 = vld [vmem:[#allocation11 + $0x408] sm:$0xff] }
 0x15d   : > { %3056 = vmatprep.mubr.f32.mxu1 %v4634_v20  ;;  %3332 = vmatprep.subr.bf16.mxu1 %v3331_v21  ;;  %v3397_v21 = vpack.c.bf16 %v1786_v9, %v1785_v8  ;;  %v1285_v8 = vld [vmem:[#allocation11 + $0x2d0] sm:$0xff]  ;;  %v4705_v9 = vld [vmem:[#allocation2 + $0x90] sm:$0xff] }
 0x15e   : > { %3386 = vmatpush3.bf16.msra.mxu0 %v3385_v26  ;;  %v1788_v26 = vld [vmem:[#allocation11 + $0x368] sm:$0xff] }
 0x15f   : > { %882 = vmatmul.mubr.f32.gmra.mrb[10].mxu0 %v4639_v33  ;;  %3388 = vmatprep.subr.bf16.mxu0 %v3387_v28  ;;  %v1278_v28 = vld [vmem:[#allocation11 + $0x298] sm:$0xff] }
 0x160   : > { %3057 = vmatmul.mubr.f32.gmra.mrb[10].mxu1 %v4642_v37  ;;  %886 = vmatprep.mubr.f32.mxu0 %v4644_v39  ;;  %v3347_v42 = vpack.c.bf16 %v1278_v28, %v1277_v27  ;;  %v4724_v27 = vld [vmem:[#allocation2 + $0xb1] sm:$0xff] }
 0x161   : > { %3334 = vmatpush3.bf16.msra.mxu1 %v3333_v38  ;;  %3059 = vmatprep.mubr.f32.mxu1 %v4646_v40  ;;  %v3401_v38 = vpack.c.bf16 %v1788_v26, %v1787_v22  ;;  %v3367_v22 = vpack.c.bf16 %v1288_v13, %v1287_v12  ;;  %v4721_v26 = vld [vmem:[#allocation2 + $0xa8] sm:$0xff] }
 0x162   : > { %3336 = vmatprep.subr.bf16.mxu1 %v3335_v41  ;;  %3390 = vmatpush3.bf16.msra.mxu0 %v3389_v46  ;;  %v1789_v41 = vld [vmem:[#allocation11 + $0x370] sm:$0xff]  ;;  %v1279_v46 = vld [vmem:[#allocation11 + $0x2a0] sm:$0xff] }
 0x163   : > { %887 = vmatmul.mubr.f32.gmra.mrb[12].mxu0 %v4651_v54  ;;  %3392 = vmatprep.subr.bf16.mxu0 %v3391_v49  ;;  %v4681_v49 = vld [vmem:[#allocation2 + $0x68] sm:$0xff]  ;;  %v3405_v52 = vpack.c.bf16 %v1790_v44, %v1789_v41  ;;  %v3351_v53 = vpack.c.bf16 %v1280_v47, %v1279_v46  ;;  %v3407_v41 = vpack.c.bf16 %v1808_v35, %v1807_v30  ;;  %v1817_v46 = vld [vmem:[#allocation11 + $0x450] sm:$0xff] }
 0x164   : > { %3060 = vmatmul.mubr.f32.gmra.mrb[12].mxu1 %v4654_v57  ;;  %891 = vmatprep.mubr.f32.mxu0 %v4656_v59  ;;  %v1818_v47 = vld [vmem:[#allocation11 + $0x458] sm:$0xff] }
 0x165   : > { %3338 = vmatpush3.bf16.msra.mxu1 %v3337_v58  ;;  %3062 = vmatprep.mubr.f32.mxu1 %v4658_v60  ;;  %v3355_v58 = vpack.c.bf16 %v1282_v56, %v1281_v55  ;;  %v1821_v56 = vld [vmem:[#allocation11 + $0x470] sm:$0xff] }
 0x166   : > { %3340 = vmatprep.subr.bf16.mxu1 %v3339_v62  ;;  %3394 = vmatpush3.bf16.msra.mxu0 %v3393_v7  ;;  %v1283_v62 = vld [vmem:[#allocation11 + $0x2c0] sm:$0xff] }
 0x167   : > { %892 = vmatmul.mubr.f32.gmra.mrb[14].mxu0 %v4663_v2  ;;  %3396 = vmatprep.subr.bf16.mxu0 %v3395_v1  ;;  %v3359_v7 = vpack.c.bf16 %v1284_v63, %v1283_v62  ;;  %v1286_v1 = vld [vmem:[#allocation11 + $0x2d8] sm:$0xff] }
 0x168   : > { %3063 = vmatmul.mubr.f32.gmra.mrb[14].mxu1 %v4666_v15  ;;  %896 = vmatprep.mubr.f32.mxu0 %v4668_v18  ;;  %v3363_v11 = vpack.c.bf16 %v1286_v1, %v1285_v8  ;;  %v1176_v62 = vld [vmem:[#allocation2 + $0xc2] sm:$0xff] }
 0x169   : > { %3342 = vmatpush3.bf16.msra.mxu1 %v3341_v16  ;;  %1355 = vmatprep.mubr.f32.mxu1 %v4596_v32  ;;  %v4684_v32 = vld [vmem:[#allocation2 + $0x79] sm:$0xff] }
 0x16a   : > { %3398 = vmatpush3.bf16.msra.mxu0 %v3397_v21  ;;  %3344 = vmatprep.subr.bf16.mxu1 %v3343_v23  ;;  %v4713_v16 = vld [vmem:[#allocation2 + $0x98] sm:$0xff]  ;;  %v4716_v21 = vld [vmem:[#allocation2 + $0xa9] sm:$0xff] }
 0x16b   : > { %897 = vmatmul.mubr.f32.gmra.mrb[16].mxu0 %v4673_v29  ;;  %3400 = vmatprep.subr.bf16.mxu0 %v3399_v25  ;;  %v1290_v25 = vld [vmem:[#allocation11 + $0x2f8] sm:$0xff] }
 0x16c   : > { %1356 = vmatmul.mubr.f32.vlgmr.msra.gmra.mrb[16].mxu1 %v4603_v45  ;;  %901 = vmatprep.mubr.f32.mxu0 %v4676_v36  ;;  %v4689_v45 = vld [vmem:[#allocation2 + $0x78] sm:$0xff] }
 0x16d   : > { %1360 = vmatprep.mubr.f32.mxu1 %v4608_v50  ;;  %3346 = vmatpush3.bf16.msra.mxu1 %v3343_v23  ;;  %v4692_v50 = vld [vmem:[#allocation2 + $0x81] sm:$0xff] }
 0x16e   : > { %3402 = vmatpush3.bf16.msra.mxu0 %v3401_v38  ;;  %3348 = vmatprep.subr.bf16.mxu1 %v3347_v42  ;;  %v1289_v23 = vld [vmem:[#allocation11 + $0x2f0] sm:$0xff]  ;;  %v4729_v38 = vld [vmem:[#allocation2 + $0xb0] sm:$0xff] }
 0x16f   : > { %902 = vmatmul.mubr.f32.gmra.mrb[18].mxu0 %v4681_v49  ;;  %3404 = vmatprep.subr.bf16.mxu0 %v3403_v43  ;;  %v3371_v28 = vpack.c.bf16 %v1290_v25, %v1289_v23  ;;  %v1816_v43 = vld [vmem:[#allocation11 + $0x448] sm:$0xff] }
 0x170   : > { %1361 = vmatmul.mubr.f32.gmra.mrb[18].mxu1 %v4615_v61  ;;  %906 = vmatprep.mubr.f32.mxu0 %v4684_v32  ;;  %v4697_v61 = vld [vmem:[#allocation2 + $0x80] sm:$0xff] }
 0x171   : > { %1365 = vmatprep.mubr.f32.mxu1 %v4620_v5  ;;  %3350 = vmatpush3.bf16.msra.mxu1 %v3347_v42  ;;  %v1814_v42 = vld [vmem:[#allocation11 + $0x438] sm:$0xff] }
 0x172   : > { %3406 = vmatpush3.bf16.msra.mxu0 %v3405_v52  ;;  %3352 = vmatprep.subr.bf16.mxu1 %v3351_v53  ;;  %v1820_v52 = vld [vmem:[#allocation11 + $0x468] sm:$0xff] }
 0x173   : > { %907 = vmatmul.mubr.f32.gmra.mrb[20].mxu0 %v4689_v45 }
 0x174   : > { %1366 = vmatmul.mubr.f32.gmra.mrb[20].mxu1 %v4627_v14  ;;  %911 = vmatprep.mubr.f32.mxu0 %v4692_v50 }
 0x175   : > { %1370 = vmatprep.mubr.f32.mxu1 %v4632_v19  ;;  %3354 = vmatpush3.bf16.msra.mxu1 %v3351_v53  ;;  %v1676_v53 = vld [vmem:[#allocation2 + $0xd9] sm:$0xff] }
 0x176   : > { %3356 = vmatprep.subr.bf16.mxu1 %v3355_v58 }
 0x177   : > { %912 = vmatmul.mubr.f32.gmra.mrb[22].mxu0 %v4697_v61 }
 0x178   : > { %1371 = vmatmul.mubr.f32.gmra.mrb[22].mxu1 %v4639_v33  ;;  %916 = vmatprep.mubr.f32.mxu0 %v4700_v4 }
 0x179   : > { %1375 = vmatprep.mubr.f32.mxu1 %v4644_v39  ;;  %3358 = vmatpush3.bf16.msra.mxu1 %v3355_v58  ;;  %v1677_v58 = vld [vmem:[#allocation2 + $0xe1] sm:$0xff] }
 0x17a   : > { %3360 = vmatprep.subr.bf16.mxu1 %v3359_v7 }
 0x17b   : > { %917 = vmatmul.mubr.f32.gmra.mrb[24].mxu0 %v4705_v9 }
 0x17c   : > { %1376 = vmatmul.mubr.f32.gmra.mrb[24].mxu1 %v4651_v54  ;;  %921 = vmatprep.mubr.f32.mxu0 %v4708_v10 }
 0x17d   : > { %1380 = vmatprep.mubr.f32.mxu1 %v4656_v59  ;;  %3362 = vmatpush3.bf16.msra.mxu1 %v3359_v7  ;;  %v4048_v7 = vmov 0.0|0.0  }
 0x17e   : > { %3364 = vmatprep.subr.bf16.mxu1 %v3363_v11  ;;  %3439 = vmatprep.subr.bf16.mxu0 %v4048_v7 }
 0x17f   : > { %922 = vmatmul.mubr.f32.gmra.mrb[26].mxu0 %v4713_v16 }
 0x180   : > { %1381 = vmatmul.mubr.f32.gmra.mrb[26].mxu1 %v4663_v2  ;;  %926 = vmatprep.mubr.f32.mxu0 %v4716_v21 }
 0x181   : > { %1385 = vmatprep.mubr.f32.mxu1 %v4668_v18  ;;  %3366 = vmatpush3.bf16.msra.mxu1 %v3363_v11 }
 0x182   : > { %3368 = vmatprep.subr.bf16.mxu1 %v3367_v22 }
 0x183   : > { %927 = vmatmul.mubr.f32.gmra.mrb[28].mxu0 %v4721_v26 }
 0x184   : > { %1386 = vmatmul.mubr.f32.gmra.mrb[28].mxu1 %v4673_v29  ;;  %931 = vmatprep.mubr.f32.mxu0 %v4724_v27 }
 0x185   : > { %1390 = vmatprep.mubr.f32.mxu1 %v4676_v36  ;;  %3370 = vmatpush3.bf16.msra.mxu1 %v3367_v22 }
 0x186   : > { %3372 = vmatprep.subr.bf16.mxu1 %v3371_v28 }
 0x187   : > { %932 = vmatmul.mubr.f32.gmra.mrb[30].mxu0 %v4729_v38 }
 0x188   : > { %1391 = vmatmul.mubr.f32.gmra.mrb[30].mxu1 %v4681_v49  ;;  %1887 = vmatprep.mubr.f32.mxu0 %v4620_v5  ;;  %v1144_v5 = vld [vmem:[#allocation2 + $0xc1] sm:$0xff] }
 0x189   : > { %1395 = vmatprep.mubr.f32.mxu1 %v4684_v32  ;;  %3374 = vmatpush3.bf16.msra.mxu1 %v3371_v28 }
 0x18a   : > { %3408 = vmatprep.subr.bf16.mxu1 %v3407_v41 }
 0x18b   : > { %1888 = vmatmul.mubr.f32.vlgmr.msra.gmra.mrb[32].mxu0 %v4627_v14  ;;  %v1112_v14 = vld [vmem:[#allocation2 + $0xc0] sm:$0xff] }
 0x18c   : > { %1396 = vmatmul.mubr.f32.gmra.mrb[32].mxu1 %v4689_v45  ;;  %1892 = vmatprep.mubr.f32.mxu0 %v4632_v19  ;;  %v1145_v19 = vld [vmem:[#allocation2 + $0xc9] sm:$0xff] }
 0x18d   : > { %1400 = vmatprep.mubr.f32.mxu1 %v4692_v50 }
 0x18f   : > { %1893 = vmatmul.mubr.f32.gmra.mrb[34].mxu0 %v4639_v33  ;;  %v1113_v33 = vld [vmem:[#allocation2 + $0xc8] sm:$0xff] }
 0x190   : > { %1401 = vmatmul.mubr.f32.gmra.mrb[34].mxu1 %v4697_v61  ;;  %1897 = vmatprep.mubr.f32.mxu0 %v4644_v39  ;;  %v1809_v39 = vld [vmem:[#allocation11 + $0x410] sm:$0xff] }
 0x191   : > { %1405 = vmatprep.mubr.f32.mxu1 %v4700_v4 }
 0x193   : > { %1898 = vmatmul.mubr.f32.gmra.mrb[36].mxu0 %v4651_v54  ;;  %v1810_v54 = vld [vmem:[#allocation11 + $0x418] sm:$0xff] }
 0x194   : > { %1406 = vmatmul.mubr.f32.gmra.mrb[36].mxu1 %v4705_v9  ;;  %1902 = vmatprep.mubr.f32.mxu0 %v4656_v59  ;;  %v3411_v59 = vpack.c.bf16 %v1810_v54, %v1809_v39 }
 0x195   : > { %1410 = vmatprep.mubr.f32.mxu1 %v4708_v10 }
 0x197   : > { %1903 = vmatmul.mubr.f32.gmra.mrb[38].mxu0 %v4663_v2  ;;  %v1811_v2 = vld [vmem:[#allocation11 + $0x420] sm:$0xff] }
 0x198   : > { %1411 = vmatmul.mubr.f32.gmra.mrb[38].mxu1 %v4713_v16  ;;  %1907 = vmatprep.mubr.f32.mxu0 %v4668_v18  ;;  %v1812_v18 = vld [vmem:[#allocation11 + $0x428] sm:$0xff] }
 0x199   : > { %1415 = vmatprep.mubr.f32.mxu1 %v4716_v21 }
 0x19b   : > { %1908 = vmatmul.mubr.f32.gmra.mrb[40].mxu0 %v4673_v29  ;;  %v3415_v29 = vpack.c.bf16 %v1812_v18, %v1811_v2 }
 0x19c   : > { %1416 = vmatmul.mubr.f32.gmra.mrb[40].mxu1 %v4721_v26  ;;  %1912 = vmatprep.mubr.f32.mxu0 %v4676_v36  ;;  %v1813_v36 = vld [vmem:[#allocation11 + $0x430] sm:$0xff] }
 0x19d   : > { %1420 = vmatprep.mubr.f32.mxu1 %v4724_v27 }
 0x19f   : > { %1913 = vmatmul.mubr.f32.gmra.mrb[42].mxu0 %v4681_v49  ;;  %v3427_v49 = vpack.c.bf16 %v1818_v47, %v1817_v46 }
 0x1a0   : > { %1421 = vmatmul.mubr.f32.gmra.mrb[42].mxu1 %v4729_v38  ;;  %1917 = vmatprep.mubr.f32.mxu0 %v4684_v32  ;;  %v1819_v32 = vld [vmem:[#allocation11 + $0x460] sm:$0xff] }
 0x1a1   : > { %1425 = vmatprep.mubr.f32.mxu1 %v1144_v5  ;;  %v3431_v55 = vpack.c.bf16 %v1820_v52, %v1819_v32 }
 0x1a3   : > { %1918 = vmatmul.mubr.f32.gmra.mrb[44].mxu0 %v4689_v45  ;;  %v1822_v45 = vld [vmem:[#allocation11 + $0x478] sm:$0xff] }
 0x1a4   : > { %1426 = vmatmul.mubr.f32.gmra.mrb[44].mxu1 %v1112_v14  ;;  %1922 = vmatprep.mubr.f32.mxu0 %v4692_v50  ;;  %v1644_v50 = vld [vmem:[#allocation2 + $0xd8] sm:$0xff]  ;;  %v3435_v63 = vpack.c.bf16 %v1822_v45, %v1821_v56 }
 0x1a5   : > { %1430 = vmatprep.mubr.f32.mxu1 %v1145_v19 }
 0x1a7   : > { %1923 = vmatmul.mubr.f32.gmra.mrb[46].mxu0 %v4697_v61  ;;  %v1645_v61 = vld [vmem:[#allocation2 + $0xe0] sm:$0xff] }
 0x1a8   : > { %1431 = vmatmul.mubr.f32.gmra.mrb[46].mxu1 %v1113_v33  ;;  %1927 = vmatprep.mubr.f32.mxu0 %v4700_v4  ;;  %v1177_v4 = vld [vmem:[#allocation2 + $0xca] sm:$0xff] }
 0x1a9   : > { %3097 = vmatprep.mubr.f32.mxu1 %v4592_v24  ;;  %v3419_v24 = vpack.c.bf16 %v1814_v42, %v1813_v36 }
 0x1ab   : > { %1928 = vmatmul.mubr.f32.gmra.mrb[48].mxu0 %v4705_v9 }
 0x1ac   : > { %3098 = vmatmul.mubr.f32.vlgmr.msra.gmra.mrb[0].mxu1 %v4594_v31  ;;  %1932 = vmatprep.mubr.f32.mxu0 %v4708_v10  ;;  %v1815_v31 = vld [vmem:[#allocation11 + $0x440] sm:$0xff] }
 0x1ad   : > { %3410 = vmatpush3.bf16.msra.mxu1 %v3407_v41  ;;  %3100 = vmatprep.mubr.f32.mxu1 %v4599_v34  ;;  %v3423_v44 = vpack.c.bf16 %v1816_v43, %v1815_v31 }
 0x1ae   : > { %3412 = vmatprep.subr.bf16.mxu1 %v3411_v59 }
 0x1af   : > { %1933 = vmatmul.mubr.f32.gmra.mrb[50].mxu0 %v4713_v16 }
 0x1b0   : > { %3101 = vmatmul.mubr.f32.gmra.mrb[2].mxu1 %v4606_v48  ;;  %1937 = vmatprep.mubr.f32.mxu0 %v4716_v21 }
 0x1b1   : > { %3414 = vmatpush3.bf16.msra.mxu1 %v3411_v59  ;;  %3103 = vmatprep.mubr.f32.mxu1 %v4610_v51 }
 0x1b2   : > { %3416 = vmatprep.subr.bf16.mxu1 %v3415_v29 }
 0x1b3   : > { %1938 = vmatmul.mubr.f32.gmra.mrb[52].mxu0 %v4721_v26 }
 0x1b4   : > { %3104 = vmatmul.mubr.f32.gmra.mrb[4].mxu1 %v4618_v3  ;;  %1942 = vmatprep.mubr.f32.mxu0 %v4724_v27 }
 0x1b5   : > { %3418 = vmatpush3.bf16.msra.mxu1 %v3415_v29  ;;  %3106 = vmatprep.mubr.f32.mxu1 %v4622_v6 }
 0x1b6   : > { %3420 = vmatprep.subr.bf16.mxu1 %v3419_v24 }
 0x1b7   : > { %1943 = vmatmul.mubr.f32.gmra.mrb[54].mxu0 %v4729_v38 }
 0x1b8   : > { %3107 = vmatmul.mubr.f32.gmra.mrb[6].mxu1 %v4630_v17  ;;  %1947 = vmatprep.mubr.f32.mxu0 %v1144_v5 }
 0x1b9   : > { %3422 = vmatpush3.bf16.msra.mxu1 %v3419_v24  ;;  %3109 = vmatprep.mubr.f32.mxu1 %v4634_v20 }
 0x1ba   : > { %3424 = vmatprep.subr.bf16.mxu1 %v3423_v44 }
 0x1bb   : > { %1948 = vmatmul.mubr.f32.gmra.mrb[56].mxu0 %v1112_v14 }
 0x1bc   : > { %3110 = vmatmul.mubr.f32.gmra.mrb[8].mxu1 %v4642_v37  ;;  %1952 = vmatprep.mubr.f32.mxu0 %v1145_v19 }
 0x1bd   : > { %3426 = vmatpush3.bf16.msra.mxu1 %v3423_v44  ;;  %3112 = vmatprep.mubr.f32.mxu1 %v4646_v40 }
 0x1be   : > { %3428 = vmatprep.subr.bf16.mxu1 %v3427_v49 }
 0x1bf   : > { %1953 = vmatmul.mubr.f32.gmra.mrb[58].mxu0 %v1113_v33 }
 0x1c0   : > { %3113 = vmatmul.mubr.f32.gmra.mrb[10].mxu1 %v4654_v57  ;;  %1957 = vmatprep.mubr.f32.mxu0 %v1676_v53 }
 0x1c1   : > { %3430 = vmatpush3.bf16.msra.mxu1 %v3427_v49  ;;  %3115 = vmatprep.mubr.f32.mxu1 %v4658_v60 }
 0x1c2   : > { %3432 = vmatprep.subr.bf16.mxu1 %v3431_v55 }
 0x1c3   : > { %1958 = vmatmul.mubr.f32.gmra.mrb[60].mxu0 %v1644_v50 }
 0x1c4   : > { %3116 = vmatmul.mubr.f32.gmra.mrb[12].mxu1 %v4666_v15  ;;  %1962 = vmatprep.mubr.f32.mxu0 %v1677_v58 }
 0x1c5   : > { %3434 = vmatpush3.bf16.msra.mxu1 %v3431_v55  ;;  %3118 = vmatprep.mubr.f32.mxu1 %v1176_v62 }
 0x1c6   : > { %3436 = vmatprep.subr.bf16.mxu1 %v3435_v63 }
 0x1c7   : > { %1963 = vmatmul.mubr.f32.gmra.mrb[62].mxu0 %v1645_v61 }
 0x1c8   : > { %3119 = vmatmul.mubr.f32.gmra.mrb[14].mxu1 %v1177_v4  ;;  %3209 = vmatprep.mubr.msk.f32.mxu0 %vm4049_vm0, %v4045_v0 }
 0x1c9   : > { %3438 = vmatpush3.bf16.msra.mxu1 %v3435_v63  ;;  %3153 = vmatprep.mubr.f32.mxu1 %v4599_v34  ;;  %v1708_v34 = vld [vmem:[#allocation2 + $0xda] sm:$0xff] }
 0x1cc   : > { %3154 = vmatmul.mubr.f32.vlgmr.msra.gmra.mrb[0].mxu1 %v4606_v48  ;;  %v1709_v48 = vld [vmem:[#allocation2 + $0xe2] sm:$0xff] }
 0x1cd   : > { %3156 = vmatprep.mubr.f32.mxu1 %v4610_v51 }
 0x1d0   : > { %3157 = vmatmul.mubr.f32.gmra.mrb[2].mxu1 %v4618_v3 }
 0x1d1   : > { %3159 = vmatprep.mubr.f32.mxu1 %v4622_v6 }
 0x1d4   : > { %3160 = vmatmul.mubr.f32.gmra.mrb[4].mxu1 %v4630_v17 }
 0x1d5   : > { %3162 = vmatprep.mubr.f32.mxu1 %v4634_v20 }
 0x1d8   : > { %3163 = vmatmul.mubr.f32.gmra.mrb[6].mxu1 %v4642_v37 }
 0x1d9   : > { %3165 = vmatprep.mubr.f32.mxu1 %v4646_v40 }
 0x1dc   : > { %3166 = vmatmul.mubr.f32.gmra.mrb[8].mxu1 %v4654_v57 }
 0x1dd   : > { %3168 = vmatprep.mubr.f32.mxu1 %v4658_v60 }
 0x1e0   : > { %3169 = vmatmul.mubr.f32.gmra.mrb[10].mxu1 %v4666_v15 }
 0x1e1   : > { %3171 = vmatprep.mubr.f32.mxu1 %v1176_v62 }
 0x1e4   : > { %3172 = vmatmul.mubr.f32.gmra.mrb[12].mxu1 %v1177_v4 }
 0x1e5   : > { %3174 = vmatprep.mubr.f32.mxu1 %v1708_v34 }
 0x1e8   : > { %3175 = vmatmul.mubr.f32.gmra.mrb[14].mxu1 %v1709_v48 }
 0x21e   : > { %v2671_v51 = vpop.f32.mrb[0].mxu0 }
 0x21f   : > { %v2672_v3 = vpop.f32.mrb[1].mxu0 }
 0x220   : > { %v2673_v6 = vadd.f32 %v2672_v3, %v2671_v51 }
 0x222   : > { %v2674_v17 = vpop.f32.mrb[2].mxu0 }
 0x223   : > { %v2675_v20 = vpop.f32.mrb[3].mxu0 }
 0x224   : > { %v2676_v37 = vadd.f32 %v2675_v20, %v2674_v17 }
 0x226   : > { %v2677_v40 = vpop.f32.mrb[4].mxu0 }
 0x227   : > { %v2678_v57 = vpop.f32.mrb[5].mxu0 }
 0x228   : > { %v2679_v60 = vadd.f32 %v2678_v57, %v2677_v40 }
 0x22a   : > { %v2680_v8 = vpop.f32.mrb[6].mxu0 }
 0x22b   : > { %v2681_v15 = vpop.f32.mrb[7].mxu0 }
 0x22c   : > { %v2682_v1 = vadd.f32 %v2681_v15, %v2680_v8 }
 0x22e   : > { %v2683_v9 = vpop.f32.mrb[8].mxu0 }
 0x22f   : > { %v2684_v10 = vpop.f32.mrb[9].mxu0 }
 0x230   : > { %v2685_v11 = vadd.f32 %v2684_v10, %v2683_v9 }
 0x232   : > { %v2686_v12 = vpop.f32.mrb[10].mxu0 }
 0x233   : > { %v2687_v13 = vpop.f32.mrb[11].mxu0 }
 0x234   : > { %v2688_v16 = vadd.f32 %v2687_v13, %v2686_v12 }
 0x236   : > { %v2689_v21 = vpop.f32.mrb[12].mxu0 }
 0x237   : > { %v2690_v22 = vpop.f32.mrb[13].mxu0 }
 0x238   : > { %v2691_v23 = vadd.f32 %v2690_v22, %v2689_v21 }
 0x23a   : > { %v2692_v25 = vpop.f32.mrb[14].mxu0 }
 0x23b   : > { %v2693_v26 = vpop.f32.mrb[15].mxu0 }
 0x23c   : > { %v2694_v27 = vadd.f32 %v2693_v26, %v2692_v25 }
 0x23e   : > { %v2695_v28 = vpop.f32.mrb[16].mxu0 }
 0x23f   : > { %v2783_v30 = vpop.f32.mrb[16].mxu1  ;;  %v2696_v35 = vpop.f32.mrb[17].mxu0 }
 0x240   : > { %v2784_v38 = vpop.f32.mrb[17].mxu1  ;;  %v2697_v41 = vadd.f32 %v2696_v35, %v2695_v28 }
 0x241   : > { %v2785_v5 = vadd.f32 %v2784_v38, %v2783_v30 }
 0x242   : > { %v2698_v14 = vpop.f32.mrb[18].mxu0 }
 0x243   : > { %v3490_v19 = vadd.f32 %v2785_v5, %v2673_v6  ;;  %v2786_v33 = vpop.f32.mrb[18].mxu1  ;;  %v2699_v39 = vpop.f32.mrb[19].mxu0 }
 0x244   : > { %v2787_v54 = vpop.f32.mrb[19].mxu1  ;;  %v2700_v59 = vadd.f32 %v2699_v39, %v2698_v14 }
 0x245   : > { %v2788_v2 = vadd.f32 %v2787_v54, %v2786_v33 }
 0x246   : > { %v2701_v18 = vpop.f32.mrb[20].mxu0 }
 0x247   : > { %v3487_v29 = vadd.f32 %v2788_v2, %v2676_v37  ;;  %v2789_v36 = vpop.f32.mrb[20].mxu1  ;;  %v2702_v42 = vpop.f32.mrb[21].mxu0 }
 0x248   : > { %v2790_v24 = vpop.f32.mrb[21].mxu1  ;;  %v2703_v31 = vadd.f32 %v2702_v42, %v2701_v18 }
 0x249   : > { %v2791_v43 = vadd.f32 %v2790_v24, %v2789_v36 }
 0x24a   : > { %v2704_v44 = vpop.f32.mrb[22].mxu0 }
 0x24b   : > { %v3496_v46 = vadd.f32 %v2791_v43, %v2679_v60  ;;  %v2792_v47 = vpop.f32.mrb[22].mxu1  ;;  %v2705_v49 = vpop.f32.mrb[23].mxu0 }
 0x24c   : > { %v2793_v32 = vpop.f32.mrb[23].mxu1  ;;  %v4799_v52 = vadd.f32 %v2705_v49, %v2704_v44 }
 0x24d   : > { %v2794_v53 = vadd.f32 %v2793_v32, %v2792_v47 }
 0x24e   : > { %v2707_v55 = vpop.f32.mrb[24].mxu0 }
 0x24f   : > { %v3493_v56 = vadd.f32 %v2794_v53, %v2682_v1  ;;  %v2795_v45 = vpop.f32.mrb[24].mxu1  ;;  %v2708_v50 = vpop.f32.mrb[25].mxu0 }
 0x250   : > { %v2796_v58 = vpop.f32.mrb[25].mxu1  ;;  %v4801_v62 = vadd.f32 %v2708_v50, %v2707_v55 }
 0x251   : > { %v2797_v63 = vadd.f32 %v2796_v58, %v2795_v45 }
 0x252   : > { %v2710_v61 = vpop.f32.mrb[26].mxu0 }
 0x253   : > { %v3502_v4 = vadd.f32 %v2797_v63, %v2685_v11  ;;  %v2798_v34 = vpop.f32.mrb[26].mxu1  ;;  %v2711_v48 = vpop.f32.mrb[27].mxu0 }
 0x254   : > { %v2799_v51 = vpop.f32.mrb[27].mxu1  ;;  %v4803_v3 = vadd.f32 %v2711_v48, %v2710_v61 }
 0x255   : > { %v2800_v6 = vadd.f32 %v2799_v51, %v2798_v34 }
 0x256   : > { %v2713_v17 = vpop.f32.mrb[28].mxu0 }
 0x257   : > { %v3499_v20 = vadd.f32 %v2800_v6, %v2688_v16  ;;  %v2801_v37 = vpop.f32.mrb[28].mxu1  ;;  %v2714_v40 = vpop.f32.mrb[29].mxu0 }
 0x258   : > { %v2802_v57 = vpop.f32.mrb[29].mxu1  ;;  %v4805_v60 = vadd.f32 %v2714_v40, %v2713_v17 }
 0x259   : > { %v2803_v8 = vadd.f32 %v2802_v57, %v2801_v37 }
 0x25a   : > { %v2716_v15 = vpop.f32.mrb[30].mxu0 }
 0x25b   : > { %v3508_v1 = vadd.f32 %v2803_v8, %v2691_v23  ;;  %v2804_v9 = vpop.f32.mrb[30].mxu1  ;;  %v2717_v10 = vpop.f32.mrb[31].mxu0 }
 0x25c   : > { %v2805_v12 = vpop.f32.mrb[31].mxu1  ;;  %v4807_v11 = vadd.f32 %v2717_v10, %v2716_v15 }
 0x25d   : > { %v2806_v13 = vadd.f32 %v2805_v12, %v2804_v9 }
 0x25e   : > { %v2895_v21 = vpop.f32.mrb[32].mxu0 }
 0x25f   : > { %v4809_v22 = vadd.f32 %v2806_v13, %v2694_v27  ;;  %v2807_v25 = vpop.f32.mrb[32].mxu1  ;;  %v2896_v26 = vpop.f32.mrb[33].mxu0 }
 0x260   : > { %v2808_v16 = vpop.f32.mrb[33].mxu1  ;;  %v2897_v28 = vadd.f32 %v2896_v26, %v2895_v21 }
 0x261   : > { %v2809_v30 = vadd.f32 %v2808_v16, %v2807_v25 }
 0x262   : > { %v2898_v35 = vpop.f32.mrb[34].mxu0  ;;  %v4811_v38 = vadd.f32 %v3490_v19, %v2897_v28 }
 0x263   : > { %v3514_v5 = vadd.f32 %v2809_v30, %v2697_v41  ;;  %v2810_v14 = vpop.f32.mrb[34].mxu1  ;;  %v2899_v23 = vpop.f32.mrb[35].mxu0 }
 0x264   : > { %v2811_v33 = vpop.f32.mrb[35].mxu1  ;;  %v2900_v39 = vadd.f32 %v2899_v23, %v2898_v35 }
 0x265   : > { %v2812_v54 = vadd.f32 %v2811_v33, %v2810_v14 }
 0x266   : > { %v2901_v2 = vpop.f32.mrb[36].mxu0  ;;  %v4813_v18 = vadd.f32 %v3487_v29, %v2900_v39 }
 0x267   : > { %v3511_v36 = vadd.f32 %v2812_v54, %v2700_v59  ;;  %v2813_v27 = vpop.f32.mrb[36].mxu1  ;;  %v2902_v42 = vpop.f32.mrb[37].mxu0 }
 0x268   : > { %v2814_v24 = vpop.f32.mrb[37].mxu1  ;;  %v2903_v43 = vadd.f32 %v2902_v42, %v2901_v2 }
 0x269   : > { %v2815_v44 = vadd.f32 %v2814_v24, %v2813_v27 }
 0x26a   : > { %v2904_v47 = vpop.f32.mrb[38].mxu0  ;;  %v4815_v49 = vadd.f32 %v3496_v46, %v2903_v43 }
 0x26b   : > { %v3520_v19 = vadd.f32 %v2815_v44, %v2703_v31  ;;  %v2816_v32 = vpop.f32.mrb[38].mxu1  ;;  %v2905_v41 = vpop.f32.mrb[39].mxu0 }
 0x26c   : > { %v2817_v53 = vpop.f32.mrb[39].mxu1  ;;  %v2906_v55 = vadd.f32 %v2905_v41, %v2904_v47 }
 0x26d   : > { %v2818_v45 = vadd.f32 %v2817_v53, %v2816_v32 }
 0x26e   : > { %v2907_v50 = vpop.f32.mrb[40].mxu0  ;;  %v4817_v58 = vadd.f32 %v3493_v56, %v2906_v55 }
 0x26f   : > { %v3517_v29 = vadd.f32 %v2818_v45, %v4799_v52  ;;  %v2819_v59 = vpop.f32.mrb[40].mxu1  ;;  %v2908_v63 = vpop.f32.mrb[41].mxu0 }
 0x270   : > { %v2820_v61 = vpop.f32.mrb[41].mxu1  ;;  %v2909_v34 = vadd.f32 %v2908_v63, %v2907_v50 }
 0x271   : > { %v2821_v48 = vadd.f32 %v2820_v61, %v2819_v59 }
 0x272   : > { %v2910_v51 = vpop.f32.mrb[42].mxu0  ;;  %v4820_v6 = vadd.f32 %v3502_v4, %v2909_v34 }
 0x273   : > { %v3526_v31 = vadd.f32 %v2821_v48, %v4801_v62  ;;  %v2822_v46 = vpop.f32.mrb[42].mxu1  ;;  %v2911_v17 = vpop.f32.mrb[43].mxu0 }
 0x274   : > { %v2823_v37 = vpop.f32.mrb[43].mxu1  ;;  %v2912_v40 = vadd.f32 %v2911_v17, %v2910_v51 }
 0x275   : > { %v2824_v57 = vadd.f32 %v2823_v37, %v2822_v46 }
 0x276   : > { %v2913_v8 = vpop.f32.mrb[44].mxu0  ;;  %v4823_v56 = vadd.f32 %v3499_v20, %v2912_v40 }
 0x277   : > { %v3523_v52 = vadd.f32 %v2824_v57, %v4803_v3  ;;  %v2825_v15 = vpop.f32.mrb[44].mxu1  ;;  %v2914_v9 = vpop.f32.mrb[45].mxu0 }
 0x278   : > { %v2826_v10 = vpop.f32.mrb[45].mxu1  ;;  %v2915_v12 = vadd.f32 %v2914_v9, %v2913_v8 }
 0x279   : > { %v2827_v13 = vadd.f32 %v2826_v10, %v2825_v15 }
 0x27a   : > { %v2916_v21 = vpop.f32.mrb[46].mxu0  ;;  %v4826_v4 = vadd.f32 %v3508_v1, %v2915_v12 }
 0x27b   : > { %v3532_v62 = vadd.f32 %v2827_v13, %v4805_v60  ;;  %v2828_v25 = vpop.f32.mrb[46].mxu1  ;;  %v2917_v26 = vpop.f32.mrb[47].mxu0 }
 0x27c   : > { %v2829_v16 = vpop.f32.mrb[47].mxu1  ;;  %v2918_v28 = vadd.f32 %v2917_v26, %v2916_v21 }
 0x27d   : > { %v2830_v30 = vadd.f32 %v2829_v16, %v2828_v25 }
 0x27e   : > { %v2919_v35 = vpop.f32.mrb[48].mxu0  ;;  %v4830_v20 = vadd.f32 %v4809_v22, %v2918_v28 }
 0x27f   : > { %v3529_v3 = vadd.f32 %v2830_v30, %v4807_v11  ;;  %v2920_v14 = vpop.f32.mrb[49].mxu0 }
 0x280   : > { %v2921_v23 = vadd.f32 %v2920_v14, %v2919_v35 }
 0x282   : > { %v2922_v33 = vpop.f32.mrb[50].mxu0  ;;  %v4833_v39 = vadd.f32 %v3514_v5, %v2921_v23 }
 0x283   : > { %v2923_v1 = vpop.f32.mrb[51].mxu0 }
 0x284   : > { %v2924_v54 = vadd.f32 %v2923_v1, %v2922_v33 }
 0x286   : > { %v2925_v2 = vpop.f32.mrb[52].mxu0  ;;  %v4835_v60 = vadd.f32 %v3511_v36, %v2924_v54 }
 0x287   : > { %v2926_v27 = vpop.f32.mrb[53].mxu0 }
 0x288   : > { %v2927_v42 = vadd.f32 %v2926_v27, %v2925_v2 }
 0x28a   : > { %v2928_v24 = vpop.f32.mrb[54].mxu0  ;;  %v4837_v43 = vadd.f32 %v3520_v19, %v2927_v42 }
 0x28b   : > { %v2929_v44 = vpop.f32.mrb[55].mxu0 }
 0x28c   : > { %v2930_v22 = vadd.f32 %v2929_v44, %v2928_v24 }
 0x28e   : > { %v2931_v47 = vpop.f32.mrb[56].mxu0  ;;  %v4839_v32 = vadd.f32 %v3517_v29, %v2930_v22 }
 0x28f   : > { %v2932_v11 = vpop.f32.mrb[57].mxu0 }
 0x290   : > { %v2933_v41 = vadd.f32 %v2932_v11, %v2931_v47 }
 0x292   : > { %v2934_v53 = vpop.f32.mrb[58].mxu0  ;;  %v4841_v5 = vadd.f32 %v3526_v31, %v2933_v41 }
 0x293   : > { %v2935_v55 = vpop.f32.mrb[59].mxu0 }
 0x294   : > { %v2936_v45 = vadd.f32 %v2935_v55, %v2934_v53 }
 0x296   : > { %v2937_v36 = vpop.f32.mrb[60].mxu0  ;;  %v4843_v50 = vadd.f32 %v3523_v52, %v2936_v45 }
 0x297   : > { %v2938_v59 = vpop.f32.mrb[61].mxu0 }
 0x298   : > { %v2939_v19 = vadd.f32 %v2938_v59, %v2937_v36 }
 0x29a   : > { %v2940_v63 = vpop.f32.mrb[62].mxu0  ;;  %v4845_v61 = vadd.f32 %v3532_v62, %v2939_v19 }
 0x29b   : > { %v2941_v34 = vpop.f32.mrb[63].mxu0 }
 0x29c   : > { %v2942_v29 = vadd.f32 %v2941_v34, %v2940_v63 }
 0x29e   : > { %v4847_v48 = vadd.f32 %v3529_v3, %v2942_v29 }
 0x29f   : > { %v3155_v51 = vpop.f32.mrb[0].mxu1 }
 0x2a0   : > { %v3489_v31 = vadd.f32 %v4813_v18, %v3155_v51  ;;  %v2034_v46 = vpop.f32.mrb[1].mxu1 }
 0x2a1   : > { %v3492_v17 = vadd.f32 %v4811_v38, %v2034_v46 }
 0x2a2   : > { %2178 = vst [vmem:[%s4566_s5 + $0x8] sm:$0xff] %v3489_v31  ;;  %v4852_v37 = vmul.f32 %v3489_v31, %v3489_v31 }
 0x2a3   : > { %2177 = vst [vmem:[%s4566_s5] sm:$0xff] %v3492_v17  ;;  %v3440_v40 = vpack.c.bf16 %v3489_v31, %v3492_v17  ;;  %v4855_v57 = vmul.f32 %v3492_v17, %v3492_v17  ;;  %v3158_v8 = vpop.f32.mrb[2].mxu1 }
 0x2a4   : > { %v3495_v52 = vadd.f32 %v4817_v58, %v3158_v8  ;;  %v2044_v15 = vpop.f32.mrb[3].mxu1 }
 0x2a5   : > { %v3464_v9 = vpack.c.bf16 %v4852_v37, %v4855_v57  ;;  %v3498_v18 = vadd.f32 %v4815_v49, %v2044_v15  ;;  %3441 = vmatpush3.bf16.msra.mxu0 %v3440_v40  ;;  %v4050_v40 = vmov 1.0  }
 0x2a6   : > { %2180 = vst [vmem:[%s4566_s5 + $0x18] sm:$0xff] %v3495_v52  ;;  %v4862_v38 = vmul.f32 %v3495_v52, %v3495_v52  ;;  %3442 = vmatprep.subr.bf16.mxu0 %v4048_v7 }
 0x2a7   : > { %2179 = vst [vmem:[%s4566_s5 + $0x10] sm:$0xff] %v3498_v18  ;;  %v3443_v10 = vpack.c.bf16 %v3495_v52, %v3498_v18  ;;  %v4866_v12 = vmul.f32 %v3498_v18, %v3498_v18  ;;  %v3161_v13 = vpop.f32.mrb[4].mxu1 }
 0x2a8   : > { %v3501_v58 = vadd.f32 %v4823_v56, %v3161_v13  ;;  %v2054_v21 = vpop.f32.mrb[5].mxu1 }
 0x2a9   : > { %v3467_v62 = vpack.c.bf16 %v4862_v38, %v4866_v12  ;;  %v3504_v49 = vadd.f32 %v4820_v6, %v2054_v21  ;;  %3444 = vmatpush3.bf16.msra.mxu0 %v3443_v10 }
 0x2aa   : > { %2182 = vst [vmem:[%s4566_s5 + $0x28] sm:$0xff] %v3501_v58  ;;  %v4873_v25 = vmul.f32 %v3501_v58, %v3501_v58  ;;  %3445 = vmatprep.subr.bf16.mxu0 %v4048_v7 }
 0x2ab   : > { %2181 = vst [vmem:[%s4566_s5 + $0x20] sm:$0xff] %v3504_v49  ;;  %v3446_v26 = vpack.c.bf16 %v3501_v58, %v3504_v49  ;;  %v4877_v16 = vmul.f32 %v3504_v49, %v3504_v49  ;;  %v3164_v28 = vpop.f32.mrb[6].mxu1 }
 0x2ac   : > { %v3507_v56 = vadd.f32 %v4830_v20, %v3164_v28  ;;  %v2064_v30 = vpop.f32.mrb[7].mxu1 }
 0x2ad   : > { %v3470_v35 = vpack.c.bf16 %v4873_v25, %v4877_v16  ;;  %v3510_v6 = vadd.f32 %v4826_v4, %v2064_v30  ;;  %3447 = vmatpush3.bf16.msra.mxu0 %v3446_v26 }
 0x2ae   : > { %2184 = vst [vmem:[%s4566_s5 + $0x38] sm:$0xff] %v3507_v56  ;;  %v4884_v3 = vmul.f32 %v3507_v56, %v3507_v56  ;;  %3448 = vmatprep.subr.bf16.mxu0 %v4048_v7 }
 0x2af   : > { %2183 = vst [vmem:[%s4566_s5 + $0x30] sm:$0xff] %v3510_v6  ;;  %v3449_v14 = vpack.c.bf16 %v3507_v56, %v3510_v6  ;;  %v2285_v23 = vmul.f32 %v3510_v6, %v3510_v6  ;;  %v3167_v33 = vpop.f32.mrb[8].mxu1 }
 0x2b0   : > { %v3513_v20 = vadd.f32 %v4835_v60, %v3167_v33  ;;  %v2074_v1 = vpop.f32.mrb[9].mxu1 }
 0x2b1   : > { %v3473_v54 = vpack.c.bf16 %v4884_v3, %v2285_v23  ;;  %v3516_v2 = vadd.f32 %v4833_v39, %v2074_v1  ;;  %3450 = vmatpush3.bf16.msra.mxu0 %v3449_v14 }
 0x2b2   : > { %2186 = vst [vmem:[%s4566_s5 + $0x48] sm:$0xff] %v3513_v20  ;;  %v2288_v4 = vmul.f32 %v3513_v20, %v3513_v20  ;;  %3451 = vmatprep.subr.bf16.mxu0 %v4048_v7 }
 0x2b3   : > { %2185 = vst [vmem:[%s4566_s5 + $0x40] sm:$0xff] %v3516_v2  ;;  %v3452_v27 = vpack.c.bf16 %v3513_v20, %v3516_v2  ;;  %v2287_v42 = vmul.f32 %v3516_v2, %v3516_v2  ;;  %v3170_v24 = vpop.f32.mrb[10].mxu1 }
 0x2b4   : > { %v3519_v44 = vadd.f32 %v4839_v32, %v3170_v24  ;;  %v2084_v22 = vpop.f32.mrb[11].mxu1 }
 0x2b5   : > { %v3476_v60 = vpack.c.bf16 %v2288_v4, %v2287_v42  ;;  %v3522_v47 = vadd.f32 %v4837_v43, %v2084_v22  ;;  %3453 = vmatpush3.bf16.msra.mxu0 %v3452_v27 }
 0x2b6   : > { %2188 = vst [vmem:[%s4566_s5 + $0x58] sm:$0xff] %v3519_v44  ;;  %v2290_v39 = vmul.f32 %v3519_v44, %v3519_v44  ;;  %3454 = vmatprep.subr.bf16.mxu0 %v4048_v7 }
 0x2b7   : > { %2187 = vst [vmem:[%s4566_s5 + $0x50] sm:$0xff] %v3522_v47  ;;  %v3455_v11 = vpack.c.bf16 %v3519_v44, %v3522_v47  ;;  %v2289_v41 = vmul.f32 %v3522_v47, %v3522_v47  ;;  %v3173_v53 = vpop.f32.mrb[12].mxu1 }
 0x2b8   : > { %v3525_v55 = vadd.f32 %v4843_v50, %v3173_v53  ;;  %v2094_v45 = vpop.f32.mrb[13].mxu1 }
 0x2b9   : > { %v3479_v32 = vpack.c.bf16 %v2290_v39, %v2289_v41  ;;  %v3528_v36 = vadd.f32 %v4841_v5, %v2094_v45  ;;  %3456 = vmatpush3.bf16.msra.mxu0 %v3455_v11 }
 0x2ba   : > { %2190 = vst [vmem:[%s4566_s5 + $0x68] sm:$0xff] %v3525_v55  ;;  %v2292_v43 = vmul.f32 %v3525_v55, %v3525_v55  ;;  %3457 = vmatprep.subr.bf16.mxu0 %v4048_v7 }
 0x2bb   : > { %2189 = vst [vmem:[%s4566_s5 + $0x60] sm:$0xff] %v3528_v36  ;;  %v3458_v59 = vpack.c.bf16 %v3525_v55, %v3528_v36  ;;  %v2291_v19 = vmul.f32 %v3528_v36, %v3528_v36  ;;  %v3176_v63 = vpop.f32.mrb[14].mxu1 }
 0x2bc   : > { %v3531_v34 = vadd.f32 %v4847_v48, %v3176_v63  ;;  %v2104_v29 = vpop.f32.mrb[15].mxu1 }
 0x2bd   : > { %v3482_v51 = vpack.c.bf16 %v2292_v43, %v2291_v19  ;;  %v3534_v50 = vadd.f32 %v4845_v61, %v2104_v29  ;;  %3459 = vmatpush3.bf16.msra.mxu0 %v3458_v59 }
 0x2be   : > { %2192 = vst [vmem:[%s4566_s5 + $0x78] sm:$0xff] %v3531_v34  ;;  %v2294_v31 = vmul.f32 %v3531_v34, %v3531_v34  ;;  %3460 = vmatprep.subr.bf16.mxu0 %v4048_v7 }
 0x2bf   : > { %2191 = vst [vmem:[%s4566_s5 + $0x70] sm:$0xff] %v3534_v50  ;;  %v3461_v5 = vpack.c.bf16 %v3531_v34, %v3534_v50  ;;  %v2293_v46 = vmul.f32 %v3534_v50, %v3534_v50 }
 0x2c1   : > { %v3485_v17 = vpack.c.bf16 %v2294_v31, %v2293_v46  ;;  %3462 = vmatpush3.bf16.msra.mxu0 %v3461_v5 }
 0x2c2   : > { %3463 = vmatprep.subr.bf16.mxu0 %v4048_v7 }
 0x2c4   : > { %3210 = vmatmul.mubr.f32.vlgmr.msra.gmra.mrb[64].mxu0 %v4050_v40 }
 0x2c5   : > { %3465 = vmatpush3.bf16.msra.mxu0 %v3464_v9  ;;  %3244 = vmatprep.mubr.msk.f32.mxu0 %vm4049_vm0, %v4045_v0 }
 0x2c6   : > { %3466 = vmatprep.subr.bf16.mxu0 %v4048_v7 }
 0x2c9   : > { %3468 = vmatpush3.bf16.msra.mxu0 %v3467_v62 }
 0x2ca   : > { %3469 = vmatprep.subr.bf16.mxu0 %v4048_v7 }
 0x2cd   : > { %3471 = vmatpush3.bf16.msra.mxu0 %v3470_v35 }
 0x2ce   : > { %3472 = vmatprep.subr.bf16.mxu0 %v4048_v7 }
 0x2d1   : > { %3474 = vmatpush3.bf16.msra.mxu0 %v3473_v54 }
 0x2d2   : > { %3475 = vmatprep.subr.bf16.mxu0 %v4048_v7 }
 0x2d5   : > { %3477 = vmatpush3.bf16.msra.mxu0 %v3476_v60 }
 0x2d6   : > { %3478 = vmatprep.subr.bf16.mxu0 %v4048_v7 }
 0x2d9   : > { %3480 = vmatpush3.bf16.msra.mxu0 %v3479_v32 }
 0x2da   : > { %3481 = vmatprep.subr.bf16.mxu0 %v4048_v7 }
 0x2dd   : > { %3483 = vmatpush3.bf16.msra.mxu0 %v3482_v51 }
 0x2de   : > { %3484 = vmatprep.subr.bf16.mxu0 %v4048_v7 }
 0x2e1   : > { %3486 = vmatpush3.bf16.msra.mxu0 %v3485_v17 }
 0x2e4   : > { %3245 = vmatmul.mubr.f32.vlgmr.msra.gmra.mrb[66].mxu0 %v4050_v40 }
 0x2e5   : > { %3860 = shalt.err (!%p3857_p5)
}
 0x2e6   : > { %s3861_s5 = scalar_lea.hbm %s4934_s12, 2048  ;;  %s3865_s1 = scalar_lea.hbm %s5156_s16, 8192 }
 0x2e7   : > { %p3862_p4 = scmp.ne.s32.totalorder %s4934_s12, %s3861_s5  ;;  %p3866_p1 = scmp.lt.u32.totalorder %s4934_s12, %s5156_s16 }
 0x2e8   : > { %p3867_p13 = scmp.lt.u32.totalorder %s3865_s1, %s3861_s5  ;;  %p3869_p8 = scmp.lt.u32.totalorder %s3861_s5, %s4934_s12 }
 0x2e9   : > { %p3863_p10 = pnand %p3862_p4, %p5157_p11 }
 0x2ea   : > { %p3868_p12 = por %p3867_p13, %p3866_p1 }
 0x2eb   : > { %p3864_p7 = pneg %p3863_p10 }
 0x2ec   : > { %p3870_p6 = por %p3869_p8, %p3868_p12 }
 0x2ee   : > { %p3871_p2 = pnand %p3870_p6, %p3864_p7 }
 0x2f0   : > { %3874 = shalt.err (!%p3871_p2)
}
 0x2f1   : > { %s4052_s20 = smov 128   ;;  %s4053_s3 = smov 8  }
 0x2f2   : > { %3577 = dma.vmem_to_hbm [thread:$0]  (%p5157_p11), %s4936_s24, 2048, %s4934_s12, %s2368_s25, %s4052_s20, %s4052_s20, %s4053_s3  }
 0x2f3   : > { %s2633_s23 = sshll.u32 %s5154_s2, 1  ;;  %s2407_s29 = sshll.u32 %s4570_s26, 4  ;;  %s4971_s29 = int_to_ptr.vmem [resolvable:$true] %s2407_s29 }
 0x2f4   : > { %s2403_s4 = sadd.s32 %s5153_s0, %s2633_s23  ;;  %s5158_s27 = sld [smem:[#allocation45_spill]] }
 0x2f5   : > { %s2634_s15 = sshll.u32 %s2403_s4, 5  ;;  %s2373_s24 = scalar_lea.sflag [#allocation15], %s4452_s21 }
 0x2f6   : > { %s3875_s12 = scalar_lea.vmem %s4971_s29, 32  ;;  %s4054_s0 = smov [#allocation14]  }
 0x2f7   : > { %p3876_p3 = scmp.ne.s32.totalorder %s4971_s29, %s3875_s12  ;;  %s3879_s2 = sshll.u32 %s4054_s0, 4  ;;  %s3880_s2 = int_to_ptr.vmem [resolvable:$false] %s3879_s2 }
 0x2f8   : > { %s3881_s25 = scalar_lea.vmem %s3880_s2, 64  ;;  %p3882_p5 = scmp.lt.s32.totalorder %s4971_s29, %s3880_s2 }
 0x2f9   : > { %p3877_p0 = pnand %p3876_p3, %p5157_p11  ;;  %p3883_p4 = scmp.lt.s32.totalorder %s3881_s25, %s3875_s12 }
 0x2fa   : > { %s5159_s6 = smov %s5158_s27  ;;  %s4969_s5 = scalar_lea.hbm %s5158_s27, %s2634_s15 }
 0x2fb   : > { %p3878_p9 = pneg %p3877_p0  ;;  %p3884_p10 = por %p3883_p4, %p3882_p5 }
 0x2fd   : > { %p3885_p7 = pnand %p3884_p10, %p3878_p9 }
 0x397   : > { %v2275_v0 = vpop.f32.mrb[64].mxu0 }
 0x398   : > { %2365 = vst [vmem:[%s4570_s26] sm:$0x1] %v2275_v0  ;;  %v3211_v7 = vpop.f32.mrb[65].mxu0 }
 0x3b7   : > { %v2361_v61 = vpop.f32.mrb[66].mxu0 }
 0x3b8   : > { %2366 = vst [vmem:[%s4570_s26 + $0x1] sm:$0x1] %v2361_v61  ;;  %v3246_v48 = vpop.f32.mrb[67].mxu0 }
 0x3b9   : > { %3888 = shalt.err (!%p3885_p7)
}
 0x3ba   : > { %s3889_s21 = scalar_lea.hbm %s4969_s5, 32  ;;  %s3893_s17 = scalar_lea.hbm %s5159_s6, 128 }
 0x3bb   : > { %p3890_p1 = scmp.ne.s32.totalorder %s4969_s5, %s3889_s21  ;;  %p3894_p8 = scmp.lt.u32.totalorder %s4969_s5, %s5159_s6 }
 0x3bc   : > { %p3895_p6 = scmp.lt.u32.totalorder %s3893_s17, %s3889_s21  ;;  %p3897_p3 = scmp.lt.u32.totalorder %s3889_s21, %s4969_s5 }
 0x3bd   : > { %p3891_p13 = pnand %p3890_p1, %p5157_p11 }
 0x3be   : > { %p3896_p2 = por %p3895_p6, %p3894_p8 }
 0x3bf   : > { %p3892_p12 = pneg %p3891_p13 }
 0x3c0   : > { %p3898_p0 = por %p3897_p3, %p3896_p2 }
 0x3c2   : > { %p3899_p9 = pnand %p3898_p0, %p3892_p12 }
 0x3c4   : > { %3902 = shalt.err (!%p3899_p9)
}
 0x3c5   : > { %3578 = dma.vmem_to_hbm [thread:$0]  (%p5157_p11), %s4971_s29, 32, %s4969_s5, %s2373_s24  }
 0x3c6 PF: > { %s5160_s11 = sld [smem:[#allocation37_spill]]  ;;  %p3605_p5 = scmp.ge.s32.totalorder %s4037_s14, 2 }
 0x3c7   : > { %s2419_s20 = sand.u32 1, %s4009_s30  }
 0x3c8   : > { %s2420_s3 = scalar_lea.sflag [#allocation7], %s2419_s20 }
 0x3cc   : > { %p5161_p4 = scmp.ne.s32.totalorder %s5160_s11, 0 }
 0x3ce   : > { %p3596_p10 = pnand %p3605_p5, %p5161_p4 }
 0x3d0   : > { %3976 = dma.done.wait (!%p3596_p10), %s2420_s3, 2048  }
 0x3d1   : > { %3978 = vsyncadd (!%p3596_p10), %s2420_s3, 4294965248  ;;  %s2429_s23 = scalar_lea.sflag [#allocation15], %s2419_s20 }
 0x3d2   : > { %3980 = dma.done.wait (!%p3596_p10), %s2429_s23, 32  }
 0x3d3   : > { %3982 = vsyncadd (!%p3596_p10), %s2429_s23, 4294967264  ;;  %s31_s14 = sadd.s32 1, %s4037_s14   ;;  %s5163_s24 = sld [smem:[#allocation23_spill]] }
 0x3d4   : > { %p5001_p7 = scmp.ge.s32.totalorder %s31_s14, 6   ;;  %s5164_s25 = sld [smem:[#allocation24_spill]] }
 0x3d5   : > { %s5165_s4 = sld [smem:[#allocation25_spill]]  ;;  %s5166_s29 = sld [smem:[#allocation35_spill]] }
 0x3d6   : > { %s5167_s15 = sld [smem:[#allocation26_spill]]  ;;  %s5168_s9 = sld [smem:[#allocation36_spill]] }
 0x3d7   : > { %s5169_s10 = sld [smem:[#allocation29_spill]]  ;;  %s5170_s11 = sld [smem:[#allocation30_spill]] }
 0x3d8   : > { %s5171_s12 = sld [smem:[#allocation31_spill]]  ;;  %s5172_s13 = sld [smem:[#allocation32_spill]] }
 0x3d9   : > { %s5173_s26 = smov %s5193_s18  ;;  %s5174_s27 = smov %s4001_s28 }
 0x3da   : > { %s5176_s30 = smov %s4013_s8  ;;  %30 = sbr.rel (!%p5001_p7) target bundleno = 24 (0x18), region = 156 }
 0x3db   : > { %s5175_s28 = smov %s5165_s4 }
 0x3dc   : > { %s5177_s8 = smov %s5167_s15 }
 0x3e1   :  { %2434 = vsyncpa [#allocation6], 1 }
 0x3e2   :  { %2436 = vsyncpa [#allocation6 + $0x1], 1 }
 0x3e3   :  { %2437 = vsyncpa [#allocation9], 1 }
 0x3e4   :  { %2439 = vsyncpa [#allocation9 + $0x1], 1 }
 0x3e5   :  { %2440 = vsyncpa [#allocation12], 1 }
 0x3e6   :  { %2441 = vsyncpa [#allocation7], 1 }
 0x3e7   :  { %2443 = vsyncpa [#allocation7 + $0x1], 1 }
 0x3e8   :  { %2444 = vsyncpa [#allocation15], 1 }
 0x3e9   :  { %2446 = vsyncpa [#allocation15 + $0x1], 1 }

</bundles_post_ra>
